<compile_context>
chip_gen: v5e
topology: v5e:2x2
jax: 0.10.0
libtpu: 0.0.40
codegen_flags: <defaults>
</compile_context>

<pallas_src>
import jax
import jax.numpy as jnp
from jax import lax
from jax.experimental import pallas as pl
from jax.experimental.pallas import tpu as pltpu

EPS = 1e-5


def metadata_encoder_kernel(x_ref, w1_ref, g1_ref, bt1_ref,
                            w2_ref, g2_ref, bt2_ref,
                            wl_ref, bl_ref,
                            sel1_ref, selT1_ref, sel2_ref, selT2_ref,
                            out_ref):
    # x_ref    : (B, L)        f32
    # w1_ref   : (L, L*C1)     f32  banded conv1 weight
    # g1/bt1   : (1, C1)       f32  BN1 gamma / beta
    # w2_ref   : (L*C1, L*C2)  f32  banded conv2 weight
    # g2/bt2   : (1, C2)       f32
    # wl_ref   : (L*C2, O)     f32  linear weight (rows = l*C2 + c)
    # bl_ref   : (1, O)        f32
    # sel*     : 0/1 channel gather (L*C, C) and its transpose (C, L*C)
    # out_ref  : (B, O)        f32
    B, L = x_ref.shape
    inv_n = 1.0 / float(B * L)

    def bn_relu(y, g, bt, sel, selT):
        # y: (B, L*C).  Per-channel batch stats over (B, L): sublane reduce
        # (axis 0) + lane-group reduce via the 0/1 gather matmul.
        col = jnp.sum(y, axis=0, keepdims=True)                           # (1, L*C)
        mean = jnp.dot(col, sel, preferred_element_type=jnp.float32) * inv_n   # (1, C)
        d = y - jnp.dot(mean, selT, preferred_element_type=jnp.float32)   # (B, L*C)
        dsq = jnp.sum(d * d, axis=0, keepdims=True)                       # (1, L*C)
        var = jnp.dot(dsq, sel, preferred_element_type=jnp.float32) * inv_n    # (1, C)
        scale = g * lax.rsqrt(var + EPS)                                  # (1, C)
        scale_f = jnp.dot(scale, selT, preferred_element_type=jnp.float32)
        shift_f = jnp.dot(bt, selT, preferred_element_type=jnp.float32)
        return jnp.maximum(d * scale_f + shift_f, 0.0)

    x = x_ref[...]                                                        # (B, L)

    # conv1 (1->16, k=3, pad=1) as one banded matmul; bias folded away by BN1
    y1 = jnp.dot(x, w1_ref[...], preferred_element_type=jnp.float32)      # (B, L*C1)
    h1 = bn_relu(y1, g1_ref[...], bt1_ref[...], sel1_ref[...], selT1_ref[...])

    # conv2 (16->32, k=3, pad=1) as one banded matmul; bias folded away by BN2
    y2 = jnp.dot(h1, w2_ref[...], preferred_element_type=jnp.float32)     # (B, L*C2)
    h2 = bn_relu(y2, g2_ref[...], bt2_ref[...], sel2_ref[...], selT2_ref[...])

    # flatten is a no-op in this layout; final linear + relu
    acc = jnp.dot(h2, wl_ref[...], preferred_element_type=jnp.float32)    # (B, O)
    out_ref[...] = jnp.maximum(acc + bl_ref[...], 0.0)


def _group_one_hot(lc, c):
    # (lc, c) with 1.0 at [j, j % c]   (column-group gather matrix)
    j = jnp.arange(lc) % c
    return (j[:, None] == jnp.arange(c)[None, :]).astype(jnp.float32)


def pack_params(params, input_size):
    """One-time repack of PyTorch-layout weights for the flattened-lane kernel.

    Conv biases are intentionally NOT packed: the following training-mode
    BatchNorm subtracts the per-channel batch mean, which exactly cancels any
    per-channel constant added before it.
    """
    (w1, b1, g1, bt1, w2, b2, g2, bt2, WL, bl) = params
    del b1, b2
    L = input_size
    C1 = w1.shape[0]                       # 16
    C2 = w2.shape[0]                       # 32
    O = WL.shape[0]

    li = jnp.arange(L)

    # conv1 banded weight: W1big[l_in, l*C1 + cout] = w1[cout, 0, l_in - l + 1]
    k = li[:, None, None] - li[None, :, None] + 1              # (L, L, 1)
    valid = (k >= 0) & (k <= 2)
    kc = jnp.clip(k, 0, 2)
    taps1 = w1[:, 0, :]                                         # (C1, 3)
    co1 = jnp.arange(C1)[None, None, :]
    w1big = jnp.where(valid, taps1[co1, kc], 0.0).reshape(L, L * C1)

    # conv2 banded weight: W2big[l_in*C1 + cin, l*C2 + cout] = w2[cout, cin, l_in-l+1]
    k2 = li[:, None, None, None] - li[None, None, :, None] + 1  # (L,1,L,1)
    valid2 = (k2 >= 0) & (k2 <= 2)
    kc2 = jnp.clip(k2, 0, 2)
    ci = jnp.arange(C1)[None, :, None, None]
    co2 = jnp.arange(C2)[None, None, None, :]
    w2big = jnp.where(valid2, w2[co2, ci, kc2], 0.0).reshape(L * C1, L * C2)

    # linear weight: torch flat index c*L + l  ->  row l*C2 + c
    wlf = jnp.transpose(WL.reshape(O, C2, L), (2, 1, 0)).reshape(L * C2, O)

    sel1 = _group_one_hot(L * C1, C1)
    sel2 = _group_one_hot(L * C2, C2)

    return (w1big,
            g1.reshape(1, C1), bt1.reshape(1, C1),
            w2big,
            g2.reshape(1, C2), bt2.reshape(1, C2),
            wlf, bl.reshape(1, O),
            sel1, sel1.T, sel2, sel2.T)


def metadata_encoder(x, packed):
    """x: (B, input_size) f32 -> (B, output_size) f32.  packed = pack_params()."""
    B, L = x.shape
    C1 = packed[1].shape[1]
    C2 = packed[4].shape[1]
    O = packed[6].shape[1]

    flops = (2 * B * L * (L * C1)               # conv1 banded matmul
             + 2 * B * (L * C1) * (L * C2)      # conv2 banded matmul
             + 2 * B * (L * C2) * O             # linear
             + 4 * (L * C1 * C1 + L * C2 * C2)  # BN gather/broadcast matmuls
             + 10 * B * L * (C1 + C2))          # BN / ReLU elementwise
    bytes_accessed = 4 * (B * L + L * L * C1 + L * C1 * L * C2 + L * C2 * O
                          + 2 * (C1 + C2) + O + B * O
                          + 2 * (L * C1 * C1 + L * C2 * C2))
    cost = pl.CostEstimate(flops=int(flops), transcendentals=C1 + C2,
                           bytes_accessed=int(bytes_accessed))

    vmem = pl.BlockSpec(memory_space=pltpu.MemorySpace.VMEM)
    # Single-shot kernel (no grid): everything fits VMEM with huge margin and
    # training-mode BN needs full-batch statistics.
    return pl.pallas_call(
        metadata_encoder_kernel,
        out_shape=jax.ShapeDtypeStruct((B, O), jnp.float32),
        in_specs=[vmem] * 13,
        out_specs=vmem,
        cost_estimate=cost,
    )(x, *packed)


# ----------------------------- reference ----------------------------------

def _conv1d_ref(x, w, b):
    # x: (B, Cin, L); w: (Cout, Cin, 3); padding=1
    L = x.shape[-1]
    xp = jnp.pad(x, ((0, 0), (0, 0), (1, 1)))
    y = (jnp.einsum('bcl,oc->bol', xp[:, :, 0:L], w[:, :, 0])
         + jnp.einsum('bcl,oc->bol', xp[:, :, 1:L + 1], w[:, :, 1])
         + jnp.einsum('bcl,oc->bol', xp[:, :, 2:L + 2], w[:, :, 2]))
    return y + b[None, :, None]


def _bn_train_ref(y, g, bt):
    m = jnp.mean(y, axis=(0, 2), keepdims=True)
    v = jnp.mean((y - m) ** 2, axis=(0, 2), keepdims=True)
    return g[None, :, None] * (y - m) / jnp.sqrt(v + EPS) + bt[None, :, None]


def reference(x, params):
    """Pure-JAX f32 reference mirroring the PyTorch NCW forward pass."""
    (w1, b1, g1, bt1, w2, b2, g2, bt2, WL, bl) = params
    B = x.shape[0]
    h = x[:, None, :]                                           # (B, 1, L)
    h = jax.nn.relu(_bn_train_ref(_conv1d_ref(h, w1, b1), g1, bt1))
    h = jax.nn.relu(_bn_train_ref(_conv1d_ref(h, w2, b2), g2, bt2))
    flat = h.reshape(B, -1)                                     # (B, 32*L), c*L + l
    return jax.nn.relu(flat @ WL.T + bl)


if __name__ == "__main__":
    B = 2
    input_size = 16     # L
    output_size = 32    # O

    key = jax.random.PRNGKey(0)
    ks = jax.random.split(key, 11)
    params = (
        0.3 * jax.random.normal(ks[0], (16, 1, 3), jnp.float32),          # conv1 w
        0.1 * jax.random.normal(ks[1], (16,), jnp.float32),               # conv1 b
        1.0 + 0.1 * jax.random.normal(ks[2], (16,), jnp.float32),         # bn1 gamma
        0.1 * jax.random.normal(ks[3], (16,), jnp.float32),               # bn1 beta
        0.2 * jax.random.normal(ks[4], (32, 16, 3), jnp.float32),         # conv2 w
        0.1 * jax.random.normal(ks[5], (32,), jnp.float32),               # conv2 b
        1.0 + 0.1 * jax.random.normal(ks[6], (32,), jnp.float32),         # bn2 gamma
        0.1 * jax.random.normal(ks[7], (32,), jnp.float32),               # bn2 beta
        0.1 * jax.random.normal(ks[8], (output_size, 32 * input_size),
                                jnp.float32),                              # linear w
        0.1 * jax.random.normal(ks[9], (output_size,), jnp.float32),      # linear b
    )
    x = jax.random.normal(ks[10], (B, input_size), jnp.float32)

    # one-time weight repacking (hoisted out of the forward)
    packed = jax.tree.map(jax.block_until_ready, pack_params(params, input_size))

    fwd = jax.jit(metadata_encoder)
    out = jax.block_until_ready(fwd(x, packed))

    ref = jax.block_until_ready(reference(x, params))
    max_diff = float(jnp.max(jnp.abs(out - ref)))
    assert out.shape == (B, output_size), out.shape
    assert max_diff < 1e-2, f"mismatch vs reference: max|diff|={max_diff}"

    print("KERNEL_OK")
</pallas_src>

<mosaic_0001>
module attributes {stable_mosaic.version = 11 : i64} {
  func.func @metadata_encoder_kernel(%arg0: memref<2x16xf32, #tpu.memory_space<vmem>>, %arg1: memref<16x256xf32, #tpu.memory_space<vmem>>, %arg2: memref<1x16xf32, #tpu.memory_space<vmem>>, %arg3: memref<1x16xf32, #tpu.memory_space<vmem>>, %arg4: memref<256x512xf32, #tpu.memory_space<vmem>>, %arg5: memref<1x32xf32, #tpu.memory_space<vmem>>, %arg6: memref<1x32xf32, #tpu.memory_space<vmem>>, %arg7: memref<512x32xf32, #tpu.memory_space<vmem>>, %arg8: memref<1x32xf32, #tpu.memory_space<vmem>>, %arg9: memref<256x16xf32, #tpu.memory_space<vmem>>, %arg10: memref<16x256xf32, #tpu.memory_space<vmem>>, %arg11: memref<512x32xf32, #tpu.memory_space<vmem>>, %arg12: memref<32x512xf32, #tpu.memory_space<vmem>>, %arg13: memref<2x32xf32, #tpu.memory_space<vmem>>) attributes {dimension_semantics = [], scalar_prefetch = 0 : i64, scratch_operands = 0 : i64, tpu.core_type = #tpu.core_type<tc>} {
    %c0 = arith.constant 0 : index
    %c0_0 = arith.constant 0 : index
    %0 = vector.load %arg0[%c0, %c0_0] : memref<2x16xf32, #tpu.memory_space<vmem>>, vector<2x16xf32>
    %c0_1 = arith.constant 0 : index
    %c0_2 = arith.constant 0 : index
    %1 = vector.load %arg1[%c0_1, %c0_2] : memref<16x256xf32, #tpu.memory_space<vmem>>, vector<16x256xf32>
    %cst = arith.constant dense<0.000000e+00> : vector<2x256xf32>
    %2 = tpu.matmul %0, %1, %cst {dimension_numbers = #tpu.dot_dimension_numbers<[1], [0], [0], [1], [0, 0, 1, 1], [], []>} : vector<2x16xf32>, vector<16x256xf32>, vector<2x256xf32> -> vector<2x256xf32>
    %c0_3 = arith.constant 0 : index
    %c0_4 = arith.constant 0 : index
    %3 = vector.load %arg2[%c0_3, %c0_4] : memref<1x16xf32, #tpu.memory_space<vmem>>, vector<1x16xf32>
    %c0_5 = arith.constant 0 : index
    %c0_6 = arith.constant 0 : index
    %4 = vector.load %arg3[%c0_5, %c0_6] : memref<1x16xf32, #tpu.memory_space<vmem>>, vector<1x16xf32>
    %c0_7 = arith.constant 0 : index
    %c0_8 = arith.constant 0 : index
    %5 = vector.load %arg9[%c0_7, %c0_8] : memref<256x16xf32, #tpu.memory_space<vmem>>, vector<256x16xf32>
    %c0_9 = arith.constant 0 : index
    %c0_10 = arith.constant 0 : index
    %6 = vector.load %arg10[%c0_9, %c0_10] : memref<16x256xf32, #tpu.memory_space<vmem>>, vector<16x256xf32>
    %cst_11 = arith.constant dense<0.000000e+00> : vector<256xf32>
    %7 = vector.multi_reduction <add>, %2, %cst_11 [0] : vector<2x256xf32> to vector<256xf32>
    %8 = vector.shape_cast %7 : vector<256xf32> to vector<1x256xf32>
    %cst_12 = arith.constant dense<0.000000e+00> : vector<1x16xf32>
    %9 = tpu.matmul %8, %5, %cst_12 {dimension_numbers = #tpu.dot_dimension_numbers<[1], [0], [0], [1], [0, 0, 1, 1], [], []>} : vector<1x256xf32>, vector<256x16xf32>, vector<1x16xf32> -> vector<1x16xf32>
    %cst_13 = arith.constant 3.125000e-02 : f32
    %10 = vector.broadcast %cst_13 : f32 to vector<1x16xf32>
    %11 = arith.mulf %9, %10 : vector<1x16xf32>
    %cst_14 = arith.constant dense<0.000000e+00> : vector<1x256xf32>
    %12 = tpu.matmul %11, %6, %cst_14 {dimension_numbers = #tpu.dot_dimension_numbers<[1], [0], [0], [1], [0, 0, 1, 1], [], []>} : vector<1x16xf32>, vector<16x256xf32>, vector<1x256xf32> -> vector<1x256xf32>
    %13 = vector.broadcast %12 : vector<1x256xf32> to vector<2x256xf32>
    %14 = arith.subf %2, %13 : vector<2x256xf32>
    %15 = arith.mulf %14, %14 : vector<2x256xf32>
    %cst_15 = arith.constant dense<0.000000e+00> : vector<256xf32>
    %16 = vector.multi_reduction <add>, %15, %cst_15 [0] : vector<2x256xf32> to vector<256xf32>
    %17 = vector.shape_cast %16 : vector<256xf32> to vector<1x256xf32>
    %cst_16 = arith.constant dense<0.000000e+00> : vector<1x16xf32>
    %18 = tpu.matmul %17, %5, %cst_16 {dimension_numbers = #tpu.dot_dimension_numbers<[1], [0], [0], [1], [0, 0, 1, 1], [], []>} : vector<1x256xf32>, vector<256x16xf32>, vector<1x16xf32> -> vector<1x16xf32>
    %cst_17 = arith.constant 3.125000e-02 : f32
    %19 = vector.broadcast %cst_17 : f32 to vector<1x16xf32>
    %20 = arith.mulf %18, %19 : vector<1x16xf32>
    %cst_18 = arith.constant 9.99999974E-6 : f32
    %21 = vector.broadcast %cst_18 : f32 to vector<1x16xf32>
    %22 = arith.addf %20, %21 : vector<1x16xf32>
    %23 = math.rsqrt %22 : vector<1x16xf32>
    %24 = arith.mulf %3, %23 : vector<1x16xf32>
    %cst_19 = arith.constant dense<0.000000e+00> : vector<1x256xf32>
    %25 = tpu.matmul %24, %6, %cst_19 {dimension_numbers = #tpu.dot_dimension_numbers<[1], [0], [0], [1], [0, 0, 1, 1], [], []>} : vector<1x16xf32>, vector<16x256xf32>, vector<1x256xf32> -> vector<1x256xf32>
    %cst_20 = arith.constant dense<0.000000e+00> : vector<1x256xf32>
    %26 = tpu.matmul %4, %6, %cst_20 {dimension_numbers = #tpu.dot_dimension_numbers<[1], [0], [0], [1], [0, 0, 1, 1], [], []>} : vector<1x16xf32>, vector<16x256xf32>, vector<1x256xf32> -> vector<1x256xf32>
    %27 = vector.broadcast %25 : vector<1x256xf32> to vector<2x256xf32>
    %28 = arith.mulf %14, %27 : vector<2x256xf32>
    %29 = vector.broadcast %26 : vector<1x256xf32> to vector<2x256xf32>
    %30 = arith.addf %28, %29 : vector<2x256xf32>
    %cst_21 = arith.constant 0.000000e+00 : f32
    %31 = vector.broadcast %cst_21 : f32 to vector<2x256xf32>
    %32 = arith.maximumf %30, %31 : vector<2x256xf32>
    %c0_22 = arith.constant 0 : index
    %c0_23 = arith.constant 0 : index
    %33 = vector.load %arg4[%c0_22, %c0_23] : memref<256x512xf32, #tpu.memory_space<vmem>>, vector<256x512xf32>
    %cst_24 = arith.constant dense<0.000000e+00> : vector<2x512xf32>
    %34 = tpu.matmul %32, %33, %cst_24 {dimension_numbers = #tpu.dot_dimension_numbers<[1], [0], [0], [1], [0, 0, 1, 1], [], []>} : vector<2x256xf32>, vector<256x512xf32>, vector<2x512xf32> -> vector<2x512xf32>
    %c0_25 = arith.constant 0 : index
    %c0_26 = arith.constant 0 : index
    %35 = vector.load %arg5[%c0_25, %c0_26] : memref<1x32xf32, #tpu.memory_space<vmem>>, vector<1x32xf32>
    %c0_27 = arith.constant 0 : index
    %c0_28 = arith.constant 0 : index
    %36 = vector.load %arg6[%c0_27, %c0_28] : memref<1x32xf32, #tpu.memory_space<vmem>>, vector<1x32xf32>
    %c0_29 = arith.constant 0 : index
    %c0_30 = arith.constant 0 : index
    %37 = vector.load %arg11[%c0_29, %c0_30] : memref<512x32xf32, #tpu.memory_space<vmem>>, vector<512x32xf32>
    %c0_31 = arith.constant 0 : index
    %c0_32 = arith.constant 0 : index
    %38 = vector.load %arg12[%c0_31, %c0_32] : memref<32x512xf32, #tpu.memory_space<vmem>>, vector<32x512xf32>
    %cst_33 = arith.constant dense<0.000000e+00> : vector<512xf32>
    %39 = vector.multi_reduction <add>, %34, %cst_33 [0] : vector<2x512xf32> to vector<512xf32>
    %40 = vector.shape_cast %39 : vector<512xf32> to vector<1x512xf32>
    %cst_34 = arith.constant dense<0.000000e+00> : vector<1x32xf32>
    %41 = tpu.matmul %40, %37, %cst_34 {dimension_numbers = #tpu.dot_dimension_numbers<[1], [0], [0], [1], [0, 0, 1, 1], [], []>} : vector<1x512xf32>, vector<512x32xf32>, vector<1x32xf32> -> vector<1x32xf32>
    %cst_35 = arith.constant 3.125000e-02 : f32
    %42 = vector.broadcast %cst_35 : f32 to vector<1x32xf32>
    %43 = arith.mulf %41, %42 : vector<1x32xf32>
    %cst_36 = arith.constant dense<0.000000e+00> : vector<1x512xf32>
    %44 = tpu.matmul %43, %38, %cst_36 {dimension_numbers = #tpu.dot_dimension_numbers<[1], [0], [0], [1], [0, 0, 1, 1], [], []>} : vector<1x32xf32>, vector<32x512xf32>, vector<1x512xf32> -> vector<1x512xf32>
    %45 = vector.broadcast %44 : vector<1x512xf32> to vector<2x512xf32>
    %46 = arith.subf %34, %45 : vector<2x512xf32>
    %47 = arith.mulf %46, %46 : vector<2x512xf32>
    %cst_37 = arith.constant dense<0.000000e+00> : vector<512xf32>
    %48 = vector.multi_reduction <add>, %47, %cst_37 [0] : vector<2x512xf32> to vector<512xf32>
    %49 = vector.shape_cast %48 : vector<512xf32> to vector<1x512xf32>
    %cst_38 = arith.constant dense<0.000000e+00> : vector<1x32xf32>
    %50 = tpu.matmul %49, %37, %cst_38 {dimension_numbers = #tpu.dot_dimension_numbers<[1], [0], [0], [1], [0, 0, 1, 1], [], []>} : vector<1x512xf32>, vector<512x32xf32>, vector<1x32xf32> -> vector<1x32xf32>
    %cst_39 = arith.constant 3.125000e-02 : f32
    %51 = vector.broadcast %cst_39 : f32 to vector<1x32xf32>
    %52 = arith.mulf %50, %51 : vector<1x32xf32>
    %cst_40 = arith.constant 9.99999974E-6 : f32
    %53 = vector.broadcast %cst_40 : f32 to vector<1x32xf32>
    %54 = arith.addf %52, %53 : vector<1x32xf32>
    %55 = math.rsqrt %54 : vector<1x32xf32>
    %56 = arith.mulf %35, %55 : vector<1x32xf32>
    %cst_41 = arith.constant dense<0.000000e+00> : vector<1x512xf32>
    %57 = tpu.matmul %56, %38, %cst_41 {dimension_numbers = #tpu.dot_dimension_numbers<[1], [0], [0], [1], [0, 0, 1, 1], [], []>} : vector<1x32xf32>, vector<32x512xf32>, vector<1x512xf32> -> vector<1x512xf32>
    %cst_42 = arith.constant dense<0.000000e+00> : vector<1x512xf32>
    %58 = tpu.matmul %36, %38, %cst_42 {dimension_numbers = #tpu.dot_dimension_numbers<[1], [0], [0], [1], [0, 0, 1, 1], [], []>} : vector<1x32xf32>, vector<32x512xf32>, vector<1x512xf32> -> vector<1x512xf32>
    %59 = vector.broadcast %57 : vector<1x512xf32> to vector<2x512xf32>
    %60 = arith.mulf %46, %59 : vector<2x512xf32>
    %61 = vector.broadcast %58 : vector<1x512xf32> to vector<2x512xf32>
    %62 = arith.addf %60, %61 : vector<2x512xf32>
    %cst_43 = arith.constant 0.000000e+00 : f32
    %63 = vector.broadcast %cst_43 : f32 to vector<2x512xf32>
    %64 = arith.maximumf %62, %63 : vector<2x512xf32>
    %c0_44 = arith.constant 0 : index
    %c0_45 = arith.constant 0 : index
    %65 = vector.load %arg7[%c0_44, %c0_45] : memref<512x32xf32, #tpu.memory_space<vmem>>, vector<512x32xf32>
    %cst_46 = arith.constant dense<0.000000e+00> : vector<2x32xf32>
    %66 = tpu.matmul %64, %65, %cst_46 {dimension_numbers = #tpu.dot_dimension_numbers<[1], [0], [0], [1], [0, 0, 1, 1], [], []>} : vector<2x512xf32>, vector<512x32xf32>, vector<2x32xf32> -> vector<2x32xf32>
    %c0_47 = arith.constant 0 : index
    %c0_48 = arith.constant 0 : index
    %67 = vector.load %arg8[%c0_47, %c0_48] : memref<1x32xf32, #tpu.memory_space<vmem>>, vector<1x32xf32>
    %68 = vector.broadcast %67 : vector<1x32xf32> to vector<2x32xf32>
    %69 = arith.addf %66, %68 : vector<2x32xf32>
    %cst_49 = arith.constant 0.000000e+00 : f32
    %70 = vector.broadcast %cst_49 : f32 to vector<2x32xf32>
    %71 = arith.maximumf %69, %70 : vector<2x32xf32>
    %c0_50 = arith.constant 0 : index
    %c0_51 = arith.constant 0 : index
    %72 = vector.load %arg13[%c0_50, %c0_51] : memref<2x32xf32, #tpu.memory_space<vmem>>, vector<2x32xf32>
    tpu.vector_store %arg13[%c0_50, %c0_51], %71 {strides = array<i32>} : memref<2x32xf32, #tpu.memory_space<vmem>>, vector<2x32xf32>,
    return
  }
}

</mosaic_0001>

<bundles_post_ra>
// kernel: metadata_encoder.1
= control target key start
LH: loop header
LB: loop body
LE: loop exit
PB: predicated region body
PF: predicated region fallthrough
CT: control target
= control target key end

     0   :  { %vm50_vm0 = vcmask 130048   ;;  %s3079_s0 = inlined_call_operand.vmem [shape: f32[2,16], index: 0, kind: input, shape index: {}]   ;;  %s3080_s1 = inlined_call_operand.vmem [shape: f32[16,256], index: 1, kind: input, shape index: {}]   ;;  %s3081_s2 = inlined_call_operand.vmem [shape: f32[1,16], index: 2, kind: input, shape index: {}]   ;;  %s3082_s3 = inlined_call_operand.vmem [shape: f32[1,16], index: 3, kind: input, shape index: {}]   ;;  %s3083_s4 = inlined_call_operand.vmem [shape: f32[256,512], index: 4, kind: input, shape index: {}]   ;;  %s3084_s5 = inlined_call_operand.vmem [shape: f32[1,32], index: 5, kind: input, shape index: {}]   ;;  %s3085_s6 = inlined_call_operand.vmem [shape: f32[1,32], index: 6, kind: input, shape index: {}]   ;;  %s3086_s7 = inlined_call_operand.vmem [shape: f32[512,32], index: 7, kind: input, shape index: {}]   ;;  %s3087_s8 = inlined_call_operand.vmem [shape: f32[1,32], index: 8, kind: input, shape index: {}]   ;;  %s3088_s9 = inlined_call_operand.vmem [shape: f32[256,16], index: 9, kind: input, shape index: {}]   ;;  %s3089_s10 = inlined_call_operand.vmem [shape: f32[16,256], index: 10, kind: input, shape index: {}]   ;;  %s3090_s11 = inlined_call_operand.vmem [shape: f32[512,32], index: 11, kind: input, shape index: {}]   ;;  %s3091_s12 = inlined_call_operand.vmem [shape: f32[32,512], index: 12, kind: input, shape index: {}]   ;;  %s3092_s13 = inlined_call_operand.hbm [shape: f32[2,32], index: 13, kind: output, shape index: {}]  }
   0x1   :  { %v48_v0 = vld [vmem:[%s3080_s1 + $0x10] sm:$0xff]  ;;  %v49_v1 = vld [vmem:[%s3080_s1 + $0x18] sm:$0xff]  ;;  %v46_v2 = vld [vmem:[%s3080_s1] sm:$0xff] }
   0x2   :  { %68 = vmatpush.msra.mxu0 %v48_v0  ;;  %88 = vmatpush.msra.mxu1 %v49_v1  ;;  %v47_v3 = vld [vmem:[%s3080_s1 + $0x8] sm:$0xff]  ;;  %v45_v4 = vld [vmem:[%s3079_s0] sm:$0x3]  ;;  %v1590_v5 = vld [vmem:[%s3088_s9 + $0x78] sm:$0xff] }
   0x3   :  { %147 = vmatpush.msra.mxu2 %v1590_v5  ;;  %v1596_v6 = vld [vmem:[%s3088_s9 + $0xf8] sm:$0xff]  ;;  %v1601_v7 = vld [vmem:[%s3088_s9 + $0x70] sm:$0xff]  ;;  %v1613_v9 = vld [vmem:[%s3088_s9 + $0x68] sm:$0xff] }
   0x4   :  { %69 = vmatpush.msra.mxu0 %v46_v2  ;;  %89 = vmatpush.msra.mxu1 %v47_v3  ;;  %v1608_v8 = vld [vmem:[%s3088_s9 + $0xf0] sm:$0xff]  ;;  %v1620_v10 = vld [vmem:[%s3088_s9 + $0xe8] sm:$0xff]  ;;  %v1625_v11 = vld [vmem:[%s3088_s9 + $0x60] sm:$0xff] }
   0x5   :  { %1449 = vmatmul.msk.f32.vlgmr.msra.gmra.mxu0 %vm50_vm0, %v45_v4  ;;  %1450 = vmatmul.msk.f32.vlgmr.msra.gmra.mxu1 %vm50_vm0, %v45_v4  ;;  %v1632_v12 = vld [vmem:[%s3088_s9 + $0xe0] sm:$0xff]  ;;  %v1637_v13 = vld [vmem:[%s3088_s9 + $0x58] sm:$0xff] }
   0x6   :  { %167 = vmatpush.msra.mxu3 %v1596_v6  ;;  %148 = vmatpush.msra.mxu2 %v1601_v7 }
   0x8   :  { %168 = vmatpush.msra.mxu3 %v1608_v8  ;;  %149 = vmatpush.msra.mxu2 %v1613_v9 }
   0x9   :  { %18 = vsyncpa [#allocation3], 0  ;;  %v1644_v14 = vld [vmem:[%s3088_s9 + $0xd8] sm:$0xff]  ;;  %v1649_v15 = vld [vmem:[%s3088_s9 + $0x50] sm:$0xff]  ;;  %vm132_vm1 = vcmask 1041408   ;;  %vm879_vm5 = vcmask 261120  }
   0xa   :  { %169 = vmatpush.msra.mxu3 %v1620_v10  ;;  %150 = vmatpush.msra.mxu2 %v1625_v11  ;;  %v1656_v16 = vld [vmem:[%s3088_s9 + $0xd0] sm:$0xff]  ;;  %v1661_v17 = vld [vmem:[%s3088_s9 + $0x48] sm:$0xff]  ;;  %v1673_v19 = vld [vmem:[%s3088_s9 + $0x40] sm:$0xff]  ;;  %s1501_s27 = smov [#allocation2]   ;;  %vm1431_vm9 = vcmask 254976  }
   0xb   :  { %v1668_v18 = vld [vmem:[%s3088_s9 + $0xc8] sm:$0xff]  ;;  %v1680_v20 = vld [vmem:[%s3088_s9 + $0xc0] sm:$0xff]  ;;  %v1685_v21 = vld [vmem:[%s3088_s9 + $0x38] sm:$0xff]  ;;  %s1438_s28 = sshll.u32 %s1501_s27, 4  ;;  %s1439_s28 = int_to_ptr.vmem [resolvable:$true] %s1438_s28 }
   0xc   :  { %170 = vmatpush.msra.mxu3 %v1632_v12  ;;  %151 = vmatpush.msra.mxu2 %v1637_v13  ;;  %v1692_v22 = vld [vmem:[%s3088_s9 + $0xb8] sm:$0xff]  ;;  %v1700_v23 = vld [vmem:[%s3088_s9 + $0x30] sm:$0xff]  ;;  %v1712_v25 = vld [vmem:[%s3088_s9 + $0x28] sm:$0xff] }
   0xd   :  { %v1705_v24 = vld [vmem:[%s3088_s9 + $0xb0] sm:$0xff]  ;;  %v1717_v26 = vld [vmem:[%s3088_s9 + $0xa8] sm:$0xff]  ;;  %v1724_v27 = vld [vmem:[%s3088_s9 + $0x20] sm:$0xff] }
   0xe   :  { %171 = vmatpush.msra.mxu3 %v1644_v14  ;;  %152 = vmatpush.msra.mxu2 %v1649_v15  ;;  %v1729_v28 = vld [vmem:[%s3088_s9 + $0xa0] sm:$0xff]  ;;  %v1736_v29 = vld [vmem:[%s3088_s9 + $0x18] sm:$0xff]  ;;  %v1746_v31 = vld [vmem:[%s3088_s9 + $0x10] sm:$0xff] }
   0xf   :  { %v1741_v30 = vld [vmem:[%s3088_s9 + $0x98] sm:$0xff]  ;;  %v1753_v32 = vld [vmem:[%s3088_s9 + $0x90] sm:$0xff]  ;;  %v1758_v33 = vld [vmem:[%s3088_s9 + $0x8] sm:$0xff] }
  0x10   :  { %172 = vmatpush.msra.mxu3 %v1656_v16  ;;  %153 = vmatpush.msra.mxu2 %v1661_v17  ;;  %v1763_v34 = vld [vmem:[%s3088_s9 + $0x88] sm:$0xff]  ;;  %v1770_v35 = vld [vmem:[%s3088_s9] sm:$0xff]  ;;  %v130_v37 = vld [vmem:[%s3089_s10 + $0x10] sm:$0xff] }
  0x11   :  { %v1775_v36 = vld [vmem:[%s3088_s9 + $0x80] sm:$0xff]  ;;  %v131_v38 = vld [vmem:[%s3089_s10 + $0x18] sm:$0xff]  ;;  %205 = vmatpush.msrb.mxu0 %v130_v37  ;;  %v129_v56 = vld [vmem:[%s3089_s10 + $0x8] sm:$0xff] }
  0x12   :  { %173 = vmatpush.msra.mxu3 %v1668_v18  ;;  %154 = vmatpush.msra.mxu2 %v1673_v19  ;;  %v128_v55 = vld [vmem:[%s3089_s10] sm:$0xff] }
  0x13   :  { %225 = vmatpush.msrb.mxu1 %v131_v38  ;;  %206 = vmatpush.msrb.mxu0 %v128_v55 }
  0x14   :  { %174 = vmatpush.msra.mxu3 %v1680_v20  ;;  %155 = vmatpush.msra.mxu2 %v1685_v21 }
  0x15   :  { %226 = vmatpush.msrb.mxu1 %v129_v56  ;;  %251 = vmatpush.msra.mxu0 %v1590_v5 }
  0x16   :  { %175 = vmatpush.msra.mxu3 %v1692_v22  ;;  %156 = vmatpush.msra.mxu2 %v1700_v23 }
  0x17   :  { %271 = vmatpush.msra.mxu1 %v1596_v6  ;;  %252 = vmatpush.msra.mxu0 %v1601_v7 }
  0x18   :  { %176 = vmatpush.msra.mxu3 %v1705_v24  ;;  %157 = vmatpush.msra.mxu2 %v1712_v25 }
  0x19   :  { %272 = vmatpush.msra.mxu1 %v1608_v8  ;;  %253 = vmatpush.msra.mxu0 %v1613_v9 }
  0x1a   :  { %177 = vmatpush.msra.mxu3 %v1717_v26  ;;  %158 = vmatpush.msra.mxu2 %v1724_v27 }
  0x1b   :  { %273 = vmatpush.msra.mxu1 %v1620_v10  ;;  %254 = vmatpush.msra.mxu0 %v1625_v11 }
  0x1c   :  { %178 = vmatpush.msra.mxu3 %v1729_v28  ;;  %159 = vmatpush.msra.mxu2 %v1736_v29 }
  0x1d   :  { %274 = vmatpush.msra.mxu1 %v1632_v12  ;;  %255 = vmatpush.msra.mxu0 %v1637_v13 }
  0x1e   :  { %179 = vmatpush.msra.mxu3 %v1741_v30  ;;  %160 = vmatpush.msra.mxu2 %v1746_v31 }
  0x1f   :  { %275 = vmatpush.msra.mxu1 %v1644_v14  ;;  %256 = vmatpush.msra.mxu0 %v1649_v15 }
  0x20   :  { %180 = vmatpush.msra.mxu3 %v1753_v32  ;;  %161 = vmatpush.msra.mxu2 %v1758_v33 }
  0x21   :  { %276 = vmatpush.msra.mxu1 %v1656_v16  ;;  %257 = vmatpush.msra.mxu0 %v1661_v17 }
  0x22   :  { %181 = vmatpush.msra.mxu3 %v1763_v34  ;;  %162 = vmatpush.msra.mxu2 %v1770_v35 }
  0x23   :  { %277 = vmatpush.msra.mxu1 %v1668_v18  ;;  %258 = vmatpush.msra.mxu0 %v1673_v19 }
  0x24   :  { %182 = vmatpush.msra.mxu3 %v1775_v36  ;;  %321 = vmatpush.msrb.mxu2 %v130_v37 }
  0x25   :  { %278 = vmatpush.msra.mxu1 %v1680_v20  ;;  %259 = vmatpush.msra.mxu0 %v1685_v21 }
  0x26   :  { %341 = vmatpush.msrb.mxu3 %v131_v38  ;;  %322 = vmatpush.msrb.mxu2 %v128_v55 }
  0x27   :  { %279 = vmatpush.msra.mxu1 %v1692_v22  ;;  %260 = vmatpush.msra.mxu0 %v1700_v23  ;;  %v460_v23 = vld [vmem:[%s3083_s4 + $0x1e0] sm:$0xff] }
  0x28   :  { %342 = vmatpush.msrb.mxu3 %v129_v56 }
  0x29   :  { %280 = vmatpush.msra.mxu1 %v1705_v24  ;;  %261 = vmatpush.msra.mxu0 %v1712_v25  ;;  %v524_v24 = vld [vmem:[%s3083_s4 + $0x3e0] sm:$0xff] }
  0x2a   :  { %v456_v25 = vld [vmem:[%s3083_s4 + $0x1c0] sm:$0xff] }
  0x2b   :  { %281 = vmatpush.msra.mxu1 %v1717_v26  ;;  %262 = vmatpush.msra.mxu0 %v1724_v27  ;;  %v520_v26 = vld [vmem:[%s3083_s4 + $0x3c0] sm:$0xff] }
  0x2d   :  { %282 = vmatpush.msra.mxu1 %v1729_v28  ;;  %263 = vmatpush.msra.mxu0 %v1736_v29  ;;  %v452_v28 = vld [vmem:[%s3083_s4 + $0x1a0] sm:$0xff] }
  0x2e   :  { %v516_v29 = vld [vmem:[%s3083_s4 + $0x3a0] sm:$0xff] }
  0x2f   :  { %283 = vmatpush.msra.mxu1 %v1741_v30  ;;  %264 = vmatpush.msra.mxu0 %v1746_v31  ;;  %v448_v30 = vld [vmem:[%s3083_s4 + $0x180] sm:$0xff] }
  0x30   :  { %v512_v31 = vld [vmem:[%s3083_s4 + $0x380] sm:$0xff] }
  0x31   :  { %284 = vmatpush.msra.mxu1 %v1753_v32  ;;  %265 = vmatpush.msra.mxu0 %v1758_v33  ;;  %v444_v32 = vld [vmem:[%s3083_s4 + $0x160] sm:$0xff] }
  0x32   :  { %v508_v33 = vld [vmem:[%s3083_s4 + $0x360] sm:$0xff] }
  0x33   :  { %285 = vmatpush.msra.mxu1 %v1763_v34  ;;  %266 = vmatpush.msra.mxu0 %v1770_v35  ;;  %v440_v34 = vld [vmem:[%s3083_s4 + $0x140] sm:$0xff] }
  0x34   :  { %v504_v35 = vld [vmem:[%s3083_s4 + $0x340] sm:$0xff] }
  0x35   :  { %286 = vmatpush.msra.mxu1 %v1775_v36 }
  0x82   :  { %v1787_v39 = vpop.f32.mrf.mxu0  ;;  %v1789_v40 = vpop.f32.mrf.mxu1 }
  0x83   :  { %v133_v41 = vsel %vm132_vm1, %v1787_v39, 0.0  ;;  %v140_v42 = vsel %vm132_vm1, %v1789_v40, 0.0 }
  0x84   :  { %v134_v43 = vrot.slane %v133_v41, 4  ;;  %v141_v44 = vrot.slane %v140_v42, 4 }
  0x86   :  { %v135_v45 = vadd.f32 %v134_v43, %v133_v41  ;;  %v142_v46 = vadd.f32 %v141_v44, %v140_v42  ;;  %v496_v41 = vld [vmem:[%s3083_s4 + $0x300] sm:$0xff] }
  0x87   :  { %v428_v43 = vld [vmem:[%s3083_s4 + $0xe0] sm:$0xff] }
  0x88   :  { %v136_v47 = vrot.slane %v135_v45, 2  ;;  %v143_v48 = vrot.slane %v142_v46, 2  ;;  %v492_v44 = vld [vmem:[%s3083_s4 + $0x2e0] sm:$0xff] }
  0x8a   :  { %v137_v49 = vadd.f32 %v136_v47, %v135_v45  ;;  %v144_v50 = vadd.f32 %v143_v48, %v142_v46  ;;  %v424_v46 = vld [vmem:[%s3083_s4 + $0xc0] sm:$0xff] }
  0x8b   :  { %v488_v47 = vld [vmem:[%s3083_s4 + $0x2c0] sm:$0xff] }
  0x8c   :  { %v138_v51 = vrot.slane %v137_v49, 1  ;;  %v145_v52 = vrot.slane %v144_v50, 1 }
  0x8e   :  { %v139_v53 = vadd.f32 %v138_v51, %v137_v49  ;;  %v146_v54 = vadd.f32 %v145_v52, %v144_v50  ;;  %v420_v49 = vld [vmem:[%s3083_s4 + $0xa0] sm:$0xff] }
  0x8f   :  { %v484_v50 = vld [vmem:[%s3083_s4 + $0x2a0] sm:$0xff] }
  0x90   :  { %163 = vmatmul.f32.vlgmr.msra.gmra.mxu2 %v139_v53  ;;  %183 = vmatmul.f32.vlgmr.msra.gmra.mxu3 %v146_v54  ;;  %v94_v52 = vld [vmem:[%s3081_s2] sm:$0x1] }
  0x91   :  { %364 = vmatpush.msra.mxu2 %v130_v37  ;;  %384 = vmatpush.msra.mxu3 %v131_v38  ;;  %v436_v37 = vld [vmem:[%s3083_s4 + $0x120] sm:$0xff] }
  0x92   :  { %v500_v38 = vld [vmem:[%s3083_s4 + $0x320] sm:$0xff] }
  0x93   :  { %365 = vmatpush.msra.mxu2 %v128_v55  ;;  %385 = vmatpush.msra.mxu3 %v129_v56  ;;  %v416_v53 = vld [vmem:[%s3083_s4 + $0x80] sm:$0xff] }
  0x94   :  { %v480_v54 = vld [vmem:[%s3083_s4 + $0x280] sm:$0xff] }
 0x113   :  { %v164_v57 = vpop.f32.mrf.mxu2  ;;  %v184_v58 = vpop.f32.mrf.mxu3 }
 0x114   :  { %v185_v59 = vadd.f32 %v184_v58, %v164_v57  ;;  %v461_v57 = vld [vmem:[%s3083_s4 + $0x1e8] sm:$0xff] }
 0x115   :  { %v525_v58 = vld [vmem:[%s3083_s4 + $0x3e8] sm:$0xff] }
 0x116   :  { %v187_v60 = vmul.f32 0.03125, %v185_v59  ;;  %v412_v59 = vld [vmem:[%s3083_s4 + $0x60] sm:$0xff] }
 0x118   :  { %1451 = vmatmul.msk.f32.vlgmr.msrb.gmra.mxu0 %vm50_vm0, %v187_v60  ;;  %1452 = vmatmul.msk.f32.vlgmr.msrb.gmra.mxu1 %vm50_vm0, %v187_v60  ;;  %v476_v60 = vld [vmem:[%s3083_s4 + $0x260] sm:$0xff] }
 0x119   :  { %528 = vmatpush.msrb.mxu0 %v460_v23  ;;  %548 = vmatpush.msrb.mxu1 %v524_v24  ;;  %v497_v23 = vld [vmem:[%s3083_s4 + $0x308] sm:$0xff]  ;;  %v454_v24 = vld [vmem:[%s3083_s4 + $0x1b0] sm:$0xff] }
 0x11b   :  { %529 = vmatpush.msrb.mxu0 %v456_v25  ;;  %549 = vmatpush.msrb.mxu1 %v520_v26  ;;  %v518_v25 = vld [vmem:[%s3083_s4 + $0x3b0] sm:$0xff]  ;;  %v429_v26 = vld [vmem:[%s3083_s4 + $0xe8] sm:$0xff] }
 0x11d   :  { %530 = vmatpush.msrb.mxu0 %v452_v28  ;;  %550 = vmatpush.msrb.mxu1 %v516_v29  ;;  %v450_v28 = vld [vmem:[%s3083_s4 + $0x190] sm:$0xff] }
 0x11e   :  { %v514_v29 = vld [vmem:[%s3083_s4 + $0x390] sm:$0xff] }
 0x11f   :  { %531 = vmatpush.msrb.mxu0 %v448_v30  ;;  %551 = vmatpush.msrb.mxu1 %v512_v31  ;;  %v425_v30 = vld [vmem:[%s3083_s4 + $0xc8] sm:$0xff] }
 0x120   :  { %v489_v31 = vld [vmem:[%s3083_s4 + $0x2c8] sm:$0xff] }
 0x121   :  { %532 = vmatpush.msrb.mxu0 %v444_v32  ;;  %552 = vmatpush.msrb.mxu1 %v508_v33  ;;  %v421_v32 = vld [vmem:[%s3083_s4 + $0xa8] sm:$0xff] }
 0x122   :  { %v485_v33 = vld [vmem:[%s3083_s4 + $0x2a8] sm:$0xff] }
 0x123   :  { %533 = vmatpush.msrb.mxu0 %v440_v34  ;;  %553 = vmatpush.msrb.mxu1 %v504_v35  ;;  %v417_v34 = vld [vmem:[%s3083_s4 + $0x88] sm:$0xff] }
 0x124   :  { %v481_v35 = vld [vmem:[%s3083_s4 + $0x288] sm:$0xff] }
 0x125   :  { %534 = vmatpush.msrb.mxu0 %v436_v37  ;;  %554 = vmatpush.msrb.mxu1 %v500_v38  ;;  %v477_v37 = vld [vmem:[%s3083_s4 + $0x268] sm:$0xff] }
 0x126   :  { %v409_v38 = vld [vmem:[%s3083_s4 + $0x48] sm:$0xff] }
 0x127   :  { %555 = vmatpush.msrb.mxu1 %v496_v41  ;;  %v469_v41 = vld [vmem:[%s3083_s4 + $0x228] sm:$0xff] }
 0x129   :  { %556 = vmatpush.msrb.mxu1 %v492_v44  ;;  %v463_v44 = vld [vmem:[%s3083_s4 + $0x1f8] sm:$0xff] }
 0x12b   :  { %557 = vmatpush.msrb.mxu1 %v488_v47  ;;  %v523_v47 = vld [vmem:[%s3083_s4 + $0x3d8] sm:$0xff] }
 0x12d   :  { %558 = vmatpush.msrb.mxu1 %v484_v50  ;;  %v451_v50 = vld [vmem:[%s3083_s4 + $0x198] sm:$0xff] }
 0x12f   :  { %559 = vmatpush.msrb.mxu1 %v480_v54  ;;  %v447_v54 = vld [vmem:[%s3083_s4 + $0x178] sm:$0xff] }
 0x131   :  { %560 = vmatpush.msrb.mxu1 %v476_v60  ;;  %v438_v60 = vld [vmem:[%s3083_s4 + $0x130] sm:$0xff] }
 0x195   :  { %v208_v61 = vpop.f32.mrf.mxu0  ;;  %v228_v62 = vpop.f32.mrf.mxu1 }
 0x196   :  { %v231_v63 = vperm.slane %v208_v61, 0  ;;  %v232_v0 = vperm.slane %v228_v62, 0  ;;  %v457_v61 = vld [vmem:[%s3083_s4 + $0x1c8] sm:$0xff] }
 0x197   :  { %v521_v62 = vld [vmem:[%s3083_s4 + $0x3c8] sm:$0xff] }
 0x198   :  { %v1836_v1 = vsub.f32 %v1787_v39, %v231_v63  ;;  %v1839_v2 = vsub.f32 %v1789_v40, %v232_v0  ;;  %v432_v40 = vld [vmem:[%s3083_s4 + $0x100] sm:$0xff] }
 0x199   :  { %535 = vmatpush.msrb.mxu0 %v432_v40  ;;  %v408_v63 = vld [vmem:[%s3083_s4 + $0x40] sm:$0xff]  ;;  %v405_v40 = vld [vmem:[%s3083_s4 + $0x28] sm:$0xff] }
 0x19a   :  { %v235_v3 = vmul.f32 %v1836_v1, %v1836_v1  ;;  %v236_v4 = vmul.f32 %v1839_v2, %v1839_v2  ;;  %v472_v0 = vld [vmem:[%s3083_s4 + $0x240] sm:$0xff] }
 0x19b   :  { %536 = vmatpush.msrb.mxu0 %v428_v43  ;;  %561 = vmatpush.msrb.mxu1 %v472_v0  ;;  %v465_v43 = vld [vmem:[%s3083_s4 + $0x208] sm:$0xff]  ;;  %v434_v0 = vld [vmem:[%s3083_s4 + $0x110] sm:$0xff] }
 0x19c   :  { %v237_v5 = vsel %vm132_vm1, %v235_v3, 0.0  ;;  %v244_v6 = vsel %vm132_vm1, %v236_v4, 0.0  ;;  %v453_v3 = vld [vmem:[%s3083_s4 + $0x1a8] sm:$0xff] }
 0x19d   :  { %v238_v7 = vrot.slane %v237_v5, 4  ;;  %v245_v8 = vrot.slane %v244_v6, 4  ;;  %537 = vmatpush.msrb.mxu0 %v424_v46  ;;  %v517_v4 = vld [vmem:[%s3083_s4 + $0x3a8] sm:$0xff]  ;;  %v459_v46 = vld [vmem:[%s3083_s4 + $0x1d8] sm:$0xff] }
 0x19f   :  { %v239_v9 = vadd.f32 %v238_v7, %v237_v5  ;;  %v246_v10 = vadd.f32 %v245_v8, %v244_v6  ;;  %538 = vmatpush.msrb.mxu0 %v420_v49  ;;  %v404_v5 = vld [vmem:[%s3083_s4 + $0x20] sm:$0xff]  ;;  %v449_v7 = vld [vmem:[%s3083_s4 + $0x188] sm:$0xff]  ;;  %v519_v49 = vld [vmem:[%s3083_s4 + $0x3b8] sm:$0xff] }
 0x1a0   :  { %v468_v6 = vld [vmem:[%s3083_s4 + $0x220] sm:$0xff]  ;;  %v513_v8 = vld [vmem:[%s3083_s4 + $0x388] sm:$0xff] }
 0x1a1   :  { %v240_v11 = vrot.slane %v239_v9, 2  ;;  %v247_v12 = vrot.slane %v246_v10, 2  ;;  %539 = vmatpush.msrb.mxu0 %v416_v53  ;;  %562 = vmatpush.msrb.mxu1 %v468_v6  ;;  %v510_v53 = vld [vmem:[%s3083_s4 + $0x370] sm:$0xff] }
 0x1a2   :  { %v430_v6 = vld [vmem:[%s3083_s4 + $0xf0] sm:$0xff] }
 0x1a3   :  { %v241_v13 = vadd.f32 %v240_v11, %v239_v9  ;;  %v248_v14 = vadd.f32 %v247_v12, %v246_v10  ;;  %540 = vmatpush.msrb.mxu0 %v412_v59  ;;  %v95_v9 = vld [vmem:[%s3082_s3] sm:$0x1]  ;;  %v445_v10 = vld [vmem:[%s3083_s4 + $0x168] sm:$0xff]  ;;  %v507_v59 = vld [vmem:[%s3083_s4 + $0x358] sm:$0xff]  ;;  %s1440_s3 = sshll.u32 %s3092_s13, 4  ;;  %s1441_s3 = int_to_ptr.hbm [resolvable:$true] %s1440_s3 }
 0x1a4   :  { %v509_v11 = vld [vmem:[%s3083_s4 + $0x368] sm:$0xff]  ;;  %v400_v12 = vld [vmem:[%s3083_s4] sm:$0xff] }
 0x1a5   :  { %v242_v15 = vrot.slane %v241_v13, 1  ;;  %v249_v16 = vrot.slane %v248_v14, 1  ;;  %541 = vmatpush.msrb.mxu0 %v408_v63  ;;  %v503_v63 = vld [vmem:[%s3083_s4 + $0x338] sm:$0xff] }
 0x1a7   :  { %v243_v17 = vadd.f32 %v242_v15, %v241_v13  ;;  %v250_v18 = vadd.f32 %v249_v16, %v248_v14  ;;  %542 = vmatpush.msrb.mxu0 %v404_v5  ;;  %v464_v13 = vld [vmem:[%s3083_s4 + $0x200] sm:$0xff]  ;;  %v441_v14 = vld [vmem:[%s3083_s4 + $0x148] sm:$0xff]  ;;  %v462_v16 = vld [vmem:[%s3083_s4 + $0x1f0] sm:$0xff] }
 0x1a8   :  { %v505_v15 = vld [vmem:[%s3083_s4 + $0x348] sm:$0xff]  ;;  %563 = vmatpush.msrb.mxu1 %v464_v13  ;;  %v499_v5 = vld [vmem:[%s3083_s4 + $0x318] sm:$0xff] }
 0x1a9   :  { %267 = vmatmul.f32.vlgmr.msra.gmra.mxu0 %v243_v17  ;;  %287 = vmatmul.f32.vlgmr.msra.gmra.mxu1 %v250_v18  ;;  %v526_v17 = vld [vmem:[%s3083_s4 + $0x3f0] sm:$0xff]  ;;  %v437_v18 = vld [vmem:[%s3083_s4 + $0x128] sm:$0xff]  ;;  %v491_v13 = vld [vmem:[%s3083_s4 + $0x2d8] sm:$0xff] }
 0x1aa   :  { %543 = vmatpush.msrb.mxu0 %v400_v12  ;;  %628 = vmatpush.msra.mxu1 %v526_v17  ;;  %v427_v12 = vld [vmem:[%s3083_s4 + $0xd8] sm:$0xff] }
 0x1ab   :  { %v487_v17 = vld [vmem:[%s3083_s4 + $0x2b8] sm:$0xff] }
 0x1ac   :  { %608 = vmatpush.msra.mxu0 %v462_v16  ;;  %v423_v16 = vld [vmem:[%s3083_s4 + $0xb8] sm:$0xff] }
 0x226   :  { %v268_v19 = vpop.f32.mrf.mxu0  ;;  %v288_v20 = vpop.f32.mrf.mxu1 }
 0x227   :  { %v289_v21 = vadd.f32 %v288_v20, %v268_v19  ;;  %v501_v19 = vld [vmem:[%s3083_s4 + $0x328] sm:$0xff]  ;;  %v458_v20 = vld [vmem:[%s3083_s4 + $0x1d0] sm:$0xff] }
 0x228   :  { %609 = vmatpush.msra.mxu0 %v458_v20  ;;  %v419_v20 = vld [vmem:[%s3083_s4 + $0x98] sm:$0xff] }
 0x229   :  { %v291_v22 = vmul.f32 0.03125, %v289_v21  ;;  %v522_v21 = vld [vmem:[%s3083_s4 + $0x3d0] sm:$0xff] }
 0x22a   :  { %629 = vmatpush.msra.mxu1 %v522_v21  ;;  %610 = vmatpush.msra.mxu0 %v454_v24  ;;  %v483_v21 = vld [vmem:[%s3083_s4 + $0x298] sm:$0xff] }
 0x22b   :  { %v292_v27 = vadd.f32 1e-05, %v291_v22  ;;  %v433_v22 = vld [vmem:[%s3083_s4 + $0x108] sm:$0xff]  ;;  %v415_v24 = vld [vmem:[%s3083_s4 + $0x78] sm:$0xff] }
 0x22c   :  { %630 = vmatpush.msra.mxu1 %v518_v25  ;;  %611 = vmatpush.msra.mxu0 %v450_v28  ;;  %v479_v25 = vld [vmem:[%s3083_s4 + $0x278] sm:$0xff] }
 0x22d   :  { %1471 = vrsqrt.f32 %v292_v27  ;;  %vm299_vm3 = vweird.f32 %v292_v27  ;;  %v411_v28 = vld [vmem:[%s3083_s4 + $0x58] sm:$0xff] }
 0x22e   :  { %631 = vmatpush.msra.mxu1 %v514_v29  ;;  %v475_v29 = vld [vmem:[%s3083_s4 + $0x258] sm:$0xff] }
 0x230   :  { %632 = vmatpush.msra.mxu1 %v510_v53  ;;  %v2251_v53 = vld [vmem:[%s3090_s11 + $0xf8] sm:$0xff] }
 0x233   :  { %v1472_v36 = vpop.eup %1471 }
 0x234   :  { %v294_v39 = vmul.f32 %v1472_v36, %v292_v27  ;;  %vm300_vm2 = vweird.f32 %v1472_v36  ;;  %v493_v27 = vld [vmem:[%s3083_s4 + $0x2e8] sm:$0xff] }
 0x235   :  { %vm301_vm4 = vmor %vm299_vm3, %vm300_vm2 }
 0x236   :  { %v295_v42 = vmul.f32 %v1472_v36, %v294_v39  ;;  %v473_v39 = vld [vmem:[%s3083_s4 + $0x248] sm:$0xff] }
 0x238   :  { %v296_v45 = vmul.f32 0.5, %v295_v42  ;;  %v401_v42 = vld [vmem:[%s3083_s4 + $0x8] sm:$0xff] }
 0x23a   :  { %v297_v48 = vsub.f32 1.5, %v296_v45  ;;  %v527_v45 = vld [vmem:[%s3083_s4 + $0x3f8] sm:$0xff] }
 0x23c   :  { %v298_v51 = vmul.f32 %v1472_v36, %v297_v48  ;;  %v455_v48 = vld [vmem:[%s3083_s4 + $0x1b8] sm:$0xff] }
 0x23e   :  { %v302_v55 = vsel %vm301_vm4, %v1472_v36, %v298_v51  ;;  %v413_v36 = vld [vmem:[%s3083_s4 + $0x68] sm:$0xff]  ;;  %v515_v51 = vld [vmem:[%s3083_s4 + $0x398] sm:$0xff] }
 0x23f   :  { %v303_v56 = vmul.f32 %v302_v55, %v94_v52  ;;  %v446_v52 = vld [vmem:[%s3083_s4 + $0x170] sm:$0xff]  ;;  %v511_v55 = vld [vmem:[%s3083_s4 + $0x378] sm:$0xff] }
 0x240   :  { %612 = vmatpush.msra.mxu0 %v446_v52  ;;  %v2246_v52 = vld [vmem:[%s3090_s11 + $0x78] sm:$0xff] }
 0x241   :  { %1453 = vmatmul.msk.f32.vlgmr.msrb.gmra.mxu2 %vm50_vm0, %v303_v56  ;;  %1454 = vmatmul.msk.f32.vlgmr.msrb.gmra.mxu3 %vm50_vm0, %v303_v56  ;;  %v442_v56 = vld [vmem:[%s3083_s4 + $0x150] sm:$0xff] }
 0x242   :  { %568 = vmatpush.msrb.mxu2 %v461_v57  ;;  %588 = vmatpush.msrb.mxu3 %v525_v58  ;;  %v506_v57 = vld [vmem:[%s3083_s4 + $0x350] sm:$0xff]  ;;  %v443_v58 = vld [vmem:[%s3083_s4 + $0x158] sm:$0xff] }
 0x243   :  { %613 = vmatpush.msra.mxu0 %v442_v56  ;;  %633 = vmatpush.msra.mxu1 %v506_v57  ;;  %v2278_v56 = vld [vmem:[%s3090_s11 + $0x170] sm:$0xff]  ;;  %v2283_v57 = vld [vmem:[%s3090_s11 + $0x68] sm:$0xff] }
 0x244   :  { %569 = vmatpush.msrb.mxu2 %v457_v61  ;;  %589 = vmatpush.msrb.mxu3 %v521_v62  ;;  %v502_v61 = vld [vmem:[%s3083_s4 + $0x330] sm:$0xff]  ;;  %v439_v62 = vld [vmem:[%s3083_s4 + $0x138] sm:$0xff] }
 0x245   :  { %614 = vmatpush.msra.mxu0 %v438_v60  ;;  %634 = vmatpush.msra.mxu1 %v502_v61  ;;  %v2305_v60 = vld [vmem:[%s3090_s11 + $0x60] sm:$0xff] }
 0x246   :  { %570 = vmatpush.msrb.mxu2 %v453_v3  ;;  %590 = vmatpush.msrb.mxu3 %v517_v4  ;;  %v498_v3 = vld [vmem:[%s3083_s4 + $0x310] sm:$0xff]  ;;  %v435_v4 = vld [vmem:[%s3083_s4 + $0x118] sm:$0xff]  ;;  %v2310_v61 = vld [vmem:[%s3090_s11 + $0xe0] sm:$0xff] }
 0x247   :  { %615 = vmatpush.msra.mxu0 %v434_v0  ;;  %635 = vmatpush.msra.mxu1 %v498_v3  ;;  %v2326_v0 = vld [vmem:[%s3090_s11 + $0xd8] sm:$0xff]  ;;  %v2333_v3 = vld [vmem:[%s3090_s11 + $0x50] sm:$0xff] }
 0x248   :  { %571 = vmatpush.msrb.mxu2 %v449_v7  ;;  %591 = vmatpush.msrb.mxu3 %v513_v8  ;;  %v494_v7 = vld [vmem:[%s3083_s4 + $0x2f0] sm:$0xff]  ;;  %v431_v8 = vld [vmem:[%s3083_s4 + $0xf8] sm:$0xff] }
 0x249   :  { %1455 = vmatmul.msk.f32.vlgmr.msra.gmra.mxu2 %vm50_vm0, %v95_v9  ;;  %1456 = vmatmul.msk.f32.vlgmr.msra.gmra.mxu3 %vm50_vm0, %v95_v9  ;;  %v495_v9 = vld [vmem:[%s3083_s4 + $0x2f8] sm:$0xff] }
 0x24a   :  { %572 = vmatpush.msrb.mxu2 %v445_v10  ;;  %592 = vmatpush.msrb.mxu3 %v509_v11  ;;  %v426_v10 = vld [vmem:[%s3083_s4 + $0xd0] sm:$0xff] }
 0x24b   :  { %616 = vmatpush.msra.mxu0 %v430_v6  ;;  %636 = vmatpush.msra.mxu1 %v494_v7  ;;  %v490_v11 = vld [vmem:[%s3083_s4 + $0x2d0] sm:$0xff]  ;;  %v2354_v6 = vld [vmem:[%s3090_s11 + $0x38] sm:$0xff] }
 0x24c   :  { %573 = vmatpush.msrb.mxu2 %v441_v14  ;;  %593 = vmatpush.msrb.mxu3 %v505_v15  ;;  %v422_v14 = vld [vmem:[%s3083_s4 + $0xb0] sm:$0xff] }
 0x24d   :  { %617 = vmatpush.msra.mxu0 %v426_v10  ;;  %637 = vmatpush.msra.mxu1 %v490_v11  ;;  %v486_v15 = vld [vmem:[%s3083_s4 + $0x2b0] sm:$0xff]  ;;  %v2383_v11 = vld [vmem:[%s3090_s11 + $0xc8] sm:$0xff] }
 0x24e   :  { %574 = vmatpush.msrb.mxu2 %v437_v18  ;;  %594 = vmatpush.msrb.mxu3 %v501_v19  ;;  %v418_v18 = vld [vmem:[%s3083_s4 + $0x90] sm:$0xff] }
 0x24f   :  { %618 = vmatpush.msra.mxu0 %v422_v14  ;;  %638 = vmatpush.msra.mxu1 %v486_v15  ;;  %v482_v19 = vld [vmem:[%s3083_s4 + $0x290] sm:$0xff]  ;;  %v2402_v14 = vld [vmem:[%s3090_s11 + $0x28] sm:$0xff]  ;;  %v2407_v15 = vld [vmem:[%s3090_s11 + $0xc0] sm:$0xff] }
 0x250   :  { %575 = vmatpush.msrb.mxu2 %v433_v22  ;;  %595 = vmatpush.msrb.mxu3 %v497_v23  ;;  %v414_v22 = vld [vmem:[%s3083_s4 + $0x70] sm:$0xff] }
 0x251   :  { %619 = vmatpush.msra.mxu0 %v418_v18  ;;  %639 = vmatpush.msra.mxu1 %v482_v19  ;;  %v478_v23 = vld [vmem:[%s3083_s4 + $0x270] sm:$0xff]  ;;  %v2426_v18 = vld [vmem:[%s3090_s11 + $0x20] sm:$0xff]  ;;  %v2431_v19 = vld [vmem:[%s3090_s11 + $0xb8] sm:$0xff] }
 0x252   :  { %576 = vmatpush.msrb.mxu2 %v429_v26  ;;  %596 = vmatpush.msrb.mxu3 %v493_v27  ;;  %v410_v26 = vld [vmem:[%s3083_s4 + $0x50] sm:$0xff]  ;;  %3118 = vst [vmem:[#allocation5_spill] sm:$0xff] %v2426_v18 }
 0x253   :  { %620 = vmatpush.msra.mxu0 %v414_v22  ;;  %640 = vmatpush.msra.mxu1 %v478_v23  ;;  %v474_v27 = vld [vmem:[%s3083_s4 + $0x250] sm:$0xff]  ;;  %v2450_v22 = vld [vmem:[%s3090_s11 + $0x18] sm:$0xff] }
 0x254   :  { %577 = vmatpush.msrb.mxu2 %v425_v30  ;;  %597 = vmatpush.msrb.mxu3 %v489_v31  ;;  %v406_v30 = vld [vmem:[%s3083_s4 + $0x30] sm:$0xff]  ;;  %3119 = vst [vmem:[#allocation6_spill] sm:$0xff] %v2450_v22 }
 0x255   :  { %621 = vmatpush.msra.mxu0 %v410_v26  ;;  %641 = vmatpush.msra.mxu1 %v474_v27  ;;  %v470_v31 = vld [vmem:[%s3083_s4 + $0x230] sm:$0xff]  ;;  %v2479_v27 = vld [vmem:[%s3090_s11 + $0xa8] sm:$0xff] }
 0x256   :  { %578 = vmatpush.msrb.mxu2 %v421_v32  ;;  %598 = vmatpush.msrb.mxu3 %v485_v33  ;;  %v407_v32 = vld [vmem:[%s3083_s4 + $0x38] sm:$0xff]  ;;  %v2359_v7 = vld [vmem:[%s3090_s11 + $0xd0] sm:$0xff] }
 0x257   :  { %v471_v33 = vld [vmem:[%s3083_s4 + $0x238] sm:$0xff]  ;;  %622 = vmatpush.msra.mxu0 %v406_v30  ;;  %642 = vmatpush.msra.mxu1 %v470_v31  ;;  %v2378_v10 = vld [vmem:[%s3090_s11 + $0x30] sm:$0xff]  ;;  %v2498_v30 = vld [vmem:[%s3090_s11 + $0x8] sm:$0xff] }
 0x258   :  { %579 = vmatpush.msrb.mxu2 %v417_v34  ;;  %599 = vmatpush.msrb.mxu3 %v481_v35  ;;  %v402_v34 = vld [vmem:[%s3083_s4 + $0x10] sm:$0xff]  ;;  %3121 = vst [vmem:[#allocation8_spill] sm:$0xff] %v2498_v30  ;;  %v2503_v31 = vld [vmem:[%s3090_s11 + $0xa0] sm:$0xff] }
 0x259   :  { %v466_v35 = vld [vmem:[%s3083_s4 + $0x210] sm:$0xff]  ;;  %623 = vmatpush.msra.mxu0 %v402_v34  ;;  %3122 = vst [vmem:[#allocation9_spill] sm:$0xff] %v2503_v31  ;;  %v2522_v34 = vld [vmem:[%s3090_s11] sm:$0xff] }
 0x25a   :  { %580 = vmatpush.msrb.mxu2 %v413_v36  ;;  %600 = vmatpush.msrb.mxu3 %v477_v37  ;;  %v403_v36 = vld [vmem:[%s3083_s4 + $0x18] sm:$0xff]  ;;  %v2455_v23 = vld [vmem:[%s3090_s11 + $0xb0] sm:$0xff]  ;;  %3124 = vst [vmem:[#allocation11_spill] sm:$0xff] %v2522_v34 }
 0x25b   :  { %v467_v37 = vld [vmem:[%s3083_s4 + $0x218] sm:$0xff]  ;;  %643 = vmatpush.msra.mxu1 %v466_v35  ;;  %v2474_v26 = vld [vmem:[%s3090_s11 + $0x10] sm:$0xff] }
 0x25c   :  { %581 = vmatpush.msrb.mxu2 %v409_v38  ;;  %601 = vmatpush.msrb.mxu3 %v473_v39  ;;  %3120 = vst [vmem:[#allocation7_spill] sm:$0xff] %v2474_v26  ;;  %v2527_v35 = vld [vmem:[%s3090_s11 + $0x98] sm:$0xff] }
 0x25d   :  { %3125 = vst [vmem:[#allocation12_spill] sm:$0xff] %v2527_v35 }
 0x25e   :  { %582 = vmatpush.msrb.mxu2 %v405_v40  ;;  %602 = vmatpush.msrb.mxu3 %v469_v41 }
 0x260   :  { %583 = vmatpush.msrb.mxu2 %v401_v42  ;;  %603 = vmatpush.msrb.mxu3 %v465_v43 }
 0x262   :  { %648 = vmatpush.msra.mxu2 %v463_v44  ;;  %668 = vmatpush.msra.mxu3 %v527_v45 }
 0x264   :  { %649 = vmatpush.msra.mxu2 %v459_v46  ;;  %669 = vmatpush.msra.mxu3 %v523_v47 }
 0x266   :  { %650 = vmatpush.msra.mxu2 %v455_v48  ;;  %670 = vmatpush.msra.mxu3 %v519_v49 }
 0x268   :  { %651 = vmatpush.msra.mxu2 %v451_v50  ;;  %671 = vmatpush.msra.mxu3 %v515_v51 }
 0x26a   :  { %652 = vmatpush.msra.mxu2 %v447_v54  ;;  %672 = vmatpush.msra.mxu3 %v511_v55  ;;  %v2266_v54 = vld [vmem:[%s3090_s11 + $0x70] sm:$0xff] }
 0x26b   :  { %v2271_v55 = vld [vmem:[%s3090_s11 + $0xf0] sm:$0xff] }
 0x26c   :  { %653 = vmatpush.msra.mxu2 %v443_v58  ;;  %673 = vmatpush.msra.mxu3 %v507_v59  ;;  %v2289_v58 = vld [vmem:[%s3090_s11 + $0xe8] sm:$0xff] }
 0x26d   :  { %v2297_v59 = vld [vmem:[%s3090_s11 + $0x168] sm:$0xff] }
 0x26e   :  { %654 = vmatpush.msra.mxu2 %v439_v62  ;;  %674 = vmatpush.msra.mxu3 %v503_v63  ;;  %v2316_v62 = vld [vmem:[%s3090_s11 + $0x160] sm:$0xff]  ;;  %v2321_v63 = vld [vmem:[%s3090_s11 + $0x58] sm:$0xff] }
 0x270   :  { %655 = vmatpush.msra.mxu2 %v435_v4  ;;  %675 = vmatpush.msra.mxu3 %v499_v5  ;;  %v2341_v4 = vld [vmem:[%s3090_s11 + $0x48] sm:$0xff]  ;;  %v2347_v5 = vld [vmem:[%s3090_s11 + $0x40] sm:$0xff] }
 0x272   :  { %656 = vmatpush.msra.mxu2 %v431_v8  ;;  %676 = vmatpush.msra.mxu3 %v495_v9  ;;  %v2364_v8 = vld [vmem:[%s3090_s11 + $0x158] sm:$0xff]  ;;  %v2371_v9 = vld [vmem:[%s3090_s11 + $0x1f0] sm:$0xff] }
 0x274   :  { %657 = vmatpush.msra.mxu2 %v427_v12  ;;  %677 = vmatpush.msra.mxu3 %v491_v13  ;;  %v2388_v12 = vld [vmem:[%s3090_s11 + $0x150] sm:$0xff]  ;;  %v2395_v13 = vld [vmem:[%s3090_s11 + $0x1e8] sm:$0xff] }
 0x276   :  { %658 = vmatpush.msra.mxu2 %v423_v16  ;;  %678 = vmatpush.msra.mxu3 %v487_v17  ;;  %v2412_v16 = vld [vmem:[%s3090_s11 + $0x148] sm:$0xff]  ;;  %v2419_v17 = vld [vmem:[%s3090_s11 + $0x1e0] sm:$0xff] }
 0x278   :  { %659 = vmatpush.msra.mxu2 %v419_v20  ;;  %679 = vmatpush.msra.mxu3 %v483_v21  ;;  %v2436_v20 = vld [vmem:[%s3090_s11 + $0x140] sm:$0xff]  ;;  %v2443_v21 = vld [vmem:[%s3090_s11 + $0x1d8] sm:$0xff] }
 0x27a   :  { %660 = vmatpush.msra.mxu2 %v415_v24  ;;  %680 = vmatpush.msra.mxu3 %v479_v25  ;;  %v2460_v24 = vld [vmem:[%s3090_s11 + $0x138] sm:$0xff]  ;;  %v2467_v25 = vld [vmem:[%s3090_s11 + $0x1d0] sm:$0xff] }
 0x27c   :  { %661 = vmatpush.msra.mxu2 %v411_v28  ;;  %681 = vmatpush.msra.mxu3 %v475_v29  ;;  %v2484_v28 = vld [vmem:[%s3090_s11 + $0x130] sm:$0xff]  ;;  %v2491_v29 = vld [vmem:[%s3090_s11 + $0x1c8] sm:$0xff] }
 0x27e   :  { %662 = vmatpush.msra.mxu2 %v407_v32  ;;  %682 = vmatpush.msra.mxu3 %v471_v33  ;;  %v2508_v32 = vld [vmem:[%s3090_s11 + $0x128] sm:$0xff]  ;;  %v2515_v33 = vld [vmem:[%s3090_s11 + $0x1c0] sm:$0xff] }
 0x27f   :  { %3123 = vst [vmem:[#allocation10_spill] sm:$0xff] %v2508_v32 }
 0x280   :  { %663 = vmatpush.msra.mxu2 %v403_v36  ;;  %683 = vmatpush.msra.mxu3 %v467_v37  ;;  %v2532_v36 = vld [vmem:[%s3090_s11 + $0x120] sm:$0xff]  ;;  %v2539_v37 = vld [vmem:[%s3090_s11 + $0x1b8] sm:$0xff] }
 0x281   :  { %3126 = vst [vmem:[#allocation13_spill] sm:$0xff] %v2532_v36 }
 0x2c4   :  { %v324_v38 = vpop.f32.mrf.mxu2  ;;  %v344_v39 = vpop.f32.mrf.mxu3 }
 0x2c5   :  { %v390_v40 = vperm.slane %v324_v38, 0  ;;  %v391_v41 = vperm.slane %v344_v39, 0  ;;  %v2546_v38 = vld [vmem:[%s3090_s11 + $0x90] sm:$0xff]  ;;  %v2551_v39 = vld [vmem:[%s3090_s11 + $0x118] sm:$0xff] }
 0x2c6   :  { %3127 = vst [vmem:[#allocation14_spill] sm:$0xff] %v2546_v38 }
 0x2c7   :  { %v392_v44 = vmul.f32 %v390_v40, %v1836_v1  ;;  %v393_v45 = vmul.f32 %v391_v41, %v1839_v2  ;;  %v2256_v1 = vld [vmem:[%s3090_s11 + $0x178] sm:$0xff]  ;;  %3128 = vst [vmem:[#allocation15_spill] sm:$0xff] %v2551_v39  ;;  %v2556_v40 = vld [vmem:[%s3090_s11 + $0x1b0] sm:$0xff]  ;;  %v2564_v41 = vld [vmem:[%s3090_s11 + $0x88] sm:$0xff] }
 0x2c8   :  { %v2261_v2 = vld [vmem:[%s3090_s11 + $0x1f8] sm:$0xff]  ;;  %3129 = vst [vmem:[#allocation16_spill] sm:$0xff] %v2564_v41 }
 0x2cc   :  { %v367_v42 = vpop.f32.mrf.mxu2  ;;  %v387_v43 = vpop.f32.mrf.mxu3 }
 0x2cd   :  { %v394_v46 = vperm.slane %v367_v42, 0  ;;  %v395_v47 = vperm.slane %v387_v43, 0  ;;  %v2569_v42 = vld [vmem:[%s3090_s11 + $0x110] sm:$0xff]  ;;  %v2574_v43 = vld [vmem:[%s3090_s11 + $0x1a8] sm:$0xff] }
 0x2ce   :  { %3130 = vst [vmem:[#allocation17_spill] sm:$0xff] %v2569_v42 }
 0x2cf   :  { %v396_v48 = vadd.f32 %v394_v46, %v392_v44  ;;  %v397_v49 = vadd.f32 %v395_v47, %v393_v45  ;;  %3131 = vst [vmem:[#allocation18_spill] sm:$0xff] %v2574_v43  ;;  %v2582_v44 = vld [vmem:[%s3090_s11 + $0x80] sm:$0xff]  ;;  %v2587_v45 = vld [vmem:[%s3090_s11 + $0x108] sm:$0xff] }
 0x2d0   :  { %3132 = vst [vmem:[#allocation19_spill] sm:$0xff] %v2582_v44  ;;  %v2592_v46 = vld [vmem:[%s3090_s11 + $0x1a0] sm:$0xff] }
 0x2d1   :  { %v398_v50 = vmax.f32 %v396_v48, 0.0  ;;  %v399_v51 = vmax.f32 %v397_v49, 0.0  ;;  %3133 = vst [vmem:[#allocation20_spill] sm:$0xff] %v2587_v45  ;;  %v2600_v47 = vld [vmem:[%s3090_s11 + $0x100] sm:$0xff]  ;;  %v2605_v48 = vld [vmem:[%s3090_s11 + $0x198] sm:$0xff]  ;;  %v2612_v49 = vld [vmem:[%s3090_s11 + $0x190] sm:$0xff] }
 0x2d2   :  { %3134 = vst [vmem:[#allocation21_spill] sm:$0xff] %v2592_v46 }
 0x2d3   :  { %544 = vmatmul.f32.vlgmr.msrb.gmra.mxu0 %v398_v50  ;;  %564 = vmatmul.f32.vlgmr.msrb.gmra.mxu1 %v399_v51  ;;  %3135 = vst [vmem:[#allocation22_spill] sm:$0xff] %v2600_v47 }
 0x2d4   :  { %584 = vmatmul.f32.vlgmr.msrb.gmra.mxu2 %v398_v50  ;;  %604 = vmatmul.f32.vlgmr.msrb.gmra.mxu3 %v399_v51  ;;  %3136 = vst [vmem:[#allocation23_spill] sm:$0xff] %v2605_v48 }
 0x2d5   :  { %798 = vmatpush.msrb.mxu0 %v2246_v52  ;;  %818 = vmatpush.msrb.mxu1 %v2251_v53  ;;  %3137 = vst [vmem:[#allocation24_spill] sm:$0xff] %v2612_v49 }
 0x2d6   :  { %838 = vmatpush.msrb.mxu2 %v2256_v1  ;;  %858 = vmatpush.msrb.mxu3 %v2261_v2 }
 0x2d7   :  { %799 = vmatpush.msrb.mxu0 %v2266_v54  ;;  %819 = vmatpush.msrb.mxu1 %v2271_v55 }
 0x2d8   :  { %839 = vmatpush.msrb.mxu2 %v2278_v56  ;;  %859 = vmatpush.msrb.mxu3 %v2371_v9 }
 0x2d9   :  { %800 = vmatpush.msrb.mxu0 %v2283_v57  ;;  %820 = vmatpush.msrb.mxu1 %v2289_v58 }
 0x2da   :  { %840 = vmatpush.msrb.mxu2 %v2297_v59  ;;  %860 = vmatpush.msrb.mxu3 %v2395_v13 }
 0x2db   :  { %624 = vmatmul.f32.vlgmr.msra.gmra.mxu0 %v398_v50  ;;  %644 = vmatmul.f32.vlgmr.msra.gmra.mxu1 %v399_v51 }
 0x2dc   :  { %664 = vmatmul.f32.vlgmr.msra.gmra.mxu2 %v398_v50  ;;  %684 = vmatmul.f32.vlgmr.msra.gmra.mxu3 %v399_v51  ;;  %v2618_v50 = vld [vmem:[%s3090_s11 + $0x188] sm:$0xff]  ;;  %v2623_v51 = vld [vmem:[%s3090_s11 + $0x180] sm:$0xff] }
 0x2dd   :  { %801 = vmatpush.msrb.mxu0 %v2305_v60  ;;  %821 = vmatpush.msrb.mxu1 %v2310_v61  ;;  %3138 = vst [vmem:[#allocation25_spill] sm:$0xff] %v2618_v50 }
 0x2de   :  { %841 = vmatpush.msrb.mxu2 %v2316_v62  ;;  %861 = vmatpush.msrb.mxu3 %v2419_v17  ;;  %3139 = vst [vmem:[#allocation26_spill] sm:$0xff] %v2623_v51 }
 0x2df   :  { %802 = vmatpush.msrb.mxu0 %v2321_v63  ;;  %822 = vmatpush.msrb.mxu1 %v2326_v0 }
 0x2e0   :  { %842 = vmatpush.msrb.mxu2 %v2364_v8  ;;  %862 = vmatpush.msrb.mxu3 %v2443_v21 }
 0x2e1   :  { %803 = vmatpush.msrb.mxu0 %v2333_v3  ;;  %823 = vmatpush.msrb.mxu1 %v2359_v7 }
 0x2e2   :  { %843 = vmatpush.msrb.mxu2 %v2388_v12  ;;  %863 = vmatpush.msrb.mxu3 %v2467_v25 }
 0x2e3   :  { %804 = vmatpush.msrb.mxu0 %v2341_v4  ;;  %824 = vmatpush.msrb.mxu1 %v2383_v11 }
 0x2e4   :  { %844 = vmatpush.msrb.mxu2 %v2412_v16  ;;  %864 = vmatpush.msrb.mxu3 %v2491_v29 }
 0x2e5   :  { %805 = vmatpush.msrb.mxu0 %v2347_v5  ;;  %825 = vmatpush.msrb.mxu1 %v2407_v15 }
 0x2e6   :  { %845 = vmatpush.msrb.mxu2 %v2436_v20  ;;  %865 = vmatpush.msrb.mxu3 %v2515_v33 }
 0x2e7   :  { %806 = vmatpush.msrb.mxu0 %v2354_v6  ;;  %826 = vmatpush.msrb.mxu1 %v2431_v19 }
 0x2e8   :  { %846 = vmatpush.msrb.mxu2 %v2460_v24  ;;  %866 = vmatpush.msrb.mxu3 %v2539_v37 }
 0x2e9   :  { %807 = vmatpush.msrb.mxu0 %v2378_v10  ;;  %827 = vmatpush.msrb.mxu1 %v2455_v23 }
 0x2ea   :  { %847 = vmatpush.msrb.mxu2 %v2484_v28  ;;  %867 = vmatpush.msrb.mxu3 %v2556_v40 }
 0x2eb   :  { %808 = vmatpush.msrb.mxu0 %v2402_v14  ;;  %828 = vmatpush.msrb.mxu1 %v2479_v27 }
 0x2ec   :  { %848 = vmatpush.msrb.mxu2 %v2508_v32  ;;  %868 = vmatpush.msrb.mxu3 %v2574_v43 }
 0x2ed   :  { %809 = vmatpush.msrb.mxu0 %v2426_v18  ;;  %829 = vmatpush.msrb.mxu1 %v2503_v31 }
 0x2ee   :  { %849 = vmatpush.msrb.mxu2 %v2532_v36  ;;  %869 = vmatpush.msrb.mxu3 %v2592_v46 }
 0x2ef   :  { %810 = vmatpush.msrb.mxu0 %v2450_v22  ;;  %830 = vmatpush.msrb.mxu1 %v2527_v35 }
 0x2f0   :  { %850 = vmatpush.msrb.mxu2 %v2551_v39  ;;  %870 = vmatpush.msrb.mxu3 %v2605_v48 }
 0x2f1   :  { %811 = vmatpush.msrb.mxu0 %v2474_v26  ;;  %831 = vmatpush.msrb.mxu1 %v2546_v38 }
 0x2f2   :  { %851 = vmatpush.msrb.mxu2 %v2569_v42  ;;  %871 = vmatpush.msrb.mxu3 %v2612_v49 }
 0x2f3   :  { %812 = vmatpush.msrb.mxu0 %v2498_v30  ;;  %832 = vmatpush.msrb.mxu1 %v2564_v41 }
 0x2f4   :  { %852 = vmatpush.msrb.mxu2 %v2587_v45  ;;  %872 = vmatpush.msrb.mxu3 %v2618_v50 }
 0x2f5   :  { %813 = vmatpush.msrb.mxu0 %v2522_v34  ;;  %833 = vmatpush.msrb.mxu1 %v2582_v44 }
 0x2f6   :  { %853 = vmatpush.msrb.mxu2 %v2600_v47  ;;  %873 = vmatpush.msrb.mxu3 %v2623_v51 }
 0x350   :  { %v545_v47 = vpop.f32.mrf.mxu0  ;;  %v565_v44 = vpop.f32.mrf.mxu1 }
 0x351   :  { %v2627_v34 = vadd.f32 %v565_v44, %v545_v47 }
 0x353   :  { %3140 = vst [vmem:[#allocation27_spill] sm:$0xff] %v2627_v34  ;;  %v770_v45 = vsel %vm132_vm1, %v2627_v34, 0.0 }
 0x354   :  { %v771_v41 = vrot.slane %v770_v45, 4 }
 0x356   :  { %v772_v30 = vadd.f32 %v771_v41, %v770_v45 }
 0x357   :  { %v585_v49 = vpop.f32.mrf.mxu2  ;;  %v605_v42 = vpop.f32.mrf.mxu3 }
 0x358   :  { %v773_v38 = vrot.slane %v772_v30, 2  ;;  %v2631_v26 = vadd.f32 %v605_v42, %v585_v49  ;;  %v625_v48 = vpop.f32.mrf.mxu0  ;;  %v645_v39 = vpop.f32.mrf.mxu1 }
 0x359   :  { %v2633_v35 = vadd.f32 %v645_v39, %v625_v48 }
 0x35a   :  { %3141 = vst [vmem:[#allocation28_spill] sm:$0xff] %v2631_v26  ;;  %v774_v50 = vadd.f32 %v773_v38, %v772_v30  ;;  %v777_v51 = vsel %vm132_vm1, %v2631_v26, 0.0 }
 0x35b   :  { %3142 = vst [vmem:[#allocation29_spill] sm:$0xff] %v2633_v35  ;;  %v778_v44 = vrot.slane %v777_v51, 4  ;;  %v784_v47 = vsel %vm132_vm1, %v2633_v35, 0.0 }
 0x35c   :  { %v775_v34 = vrot.slane %v774_v50, 1  ;;  %v785_v22 = vrot.slane %v784_v47, 4 }
 0x35d   :  { %v779_v41 = vadd.f32 %v778_v44, %v777_v51 }
 0x35e   :  { %v786_v45 = vadd.f32 %v785_v22, %v784_v47  ;;  %v776_v46 = vadd.f32 %v775_v34, %v774_v50  ;;  %v2686_v47 = vld [vmem:[%s3091_s12 + $0x58] sm:$0xff] }
 0x35f   :  { %v780_v36 = vrot.slane %v779_v41, 2  ;;  %v665_v42 = vpop.f32.mrf.mxu2  ;;  %v685_v49 = vpop.f32.mrf.mxu3 }
 0x360   :  { %v787_v31 = vrot.slane %v786_v45, 2  ;;  %v2639_v18 = vadd.f32 %v685_v49, %v665_v42  ;;  %814 = vmatmul.f32.vlgmr.msrb.gmra.mxu0 %v776_v46  ;;  %v2681_v46 = vld [vmem:[%s3091_s12 + $0x48] sm:$0xff]  ;;  %v2711_v49 = vld [vmem:[%s3091_s12 + $0x38] sm:$0xff] }
 0x361   :  { %v781_v30 = vadd.f32 %v780_v36, %v779_v41  ;;  %v2651_v36 = vld [vmem:[%s3091_s12 + $0x60] sm:$0xff]  ;;  %v2694_v41 = vld [vmem:[%s3091_s12 + $0x30] sm:$0xff]  ;;  %v2704_v42 = vld [vmem:[%s3091_s12 + $0x28] sm:$0xff] }
 0x362   :  { %v788_v38 = vadd.f32 %v787_v31, %v786_v45  ;;  %v791_v39 = vsel %vm132_vm1, %v2639_v18, 0.0  ;;  %v2646_v31 = vld [vmem:[%s3091_s12 + $0x70] sm:$0xff]  ;;  %895 = vmatpush.msra.mxu0 %v2651_v36  ;;  %v2699_v45 = vld [vmem:[%s3091_s12 + $0x20] sm:$0xff] }
 0x363   :  { %v782_v48 = vrot.slane %v781_v30, 1  ;;  %v792_v26 = vrot.slane %v791_v39, 4  ;;  %935 = vmatpush.msra.mxu2 %v2646_v31 }
 0x364   :  { %v789_v35 = vrot.slane %v788_v38, 1 }
 0x365   :  { %v793_v43 = vadd.f32 %v792_v26, %v791_v39  ;;  %v783_v32 = vadd.f32 %v782_v48, %v781_v30  ;;  %v2656_v26 = vld [vmem:[%s3091_s12 + $0x68] sm:$0xff]  ;;  %v2718_v30 = vld [vmem:[%s3091_s12 + $0x10] sm:$0xff]  ;;  %v2735_v48 = vld [vmem:[%s3091_s12 + $0x18] sm:$0xff] }
 0x366   :  { %v790_v51 = vadd.f32 %v789_v35, %v788_v38  ;;  %v2668_v35 = vld [vmem:[%s3091_s12 + $0x50] sm:$0xff]  ;;  %915 = vmatpush.msra.mxu1 %v2656_v26  ;;  %v2723_v38 = vld [vmem:[%s3091_s12] sm:$0xff]  ;;  %v2728_v39 = vld [vmem:[%s3091_s12 + $0x8] sm:$0xff] }
 0x367   :  { %v794_v22 = vrot.slane %v793_v43, 2  ;;  %834 = vmatmul.f32.vlgmr.msrb.gmra.mxu1 %v783_v32  ;;  %v2663_v32 = vld [vmem:[%s3091_s12 + $0x78] sm:$0xff]  ;;  %936 = vmatpush.msra.mxu2 %v2668_v35 }
 0x368   :  { %854 = vmatmul.f32.vlgmr.msrb.gmra.mxu2 %v790_v51  ;;  %955 = vmatpush.msra.mxu3 %v2663_v32 }
 0x369   :  { %v795_v34 = vadd.f32 %v794_v22, %v793_v43  ;;  %v2676_v43 = vld [vmem:[%s3091_s12 + $0x40] sm:$0xff]  ;;  %916 = vmatpush.msra.mxu1 %v2681_v46  ;;  %937 = vmatpush.msra.mxu2 %v2694_v41 }
 0x36a   :  { %896 = vmatpush.msra.mxu0 %v2676_v43  ;;  %956 = vmatpush.msra.mxu3 %v2686_v47 }
 0x36b   :  { %v796_v50 = vrot.slane %v795_v34, 1  ;;  %917 = vmatpush.msra.mxu1 %v2704_v42  ;;  %938 = vmatpush.msra.mxu2 %v2718_v30 }
 0x36c   :  { %897 = vmatpush.msra.mxu0 %v2699_v45  ;;  %957 = vmatpush.msra.mxu3 %v2711_v49 }
 0x36d   :  { %v797_v44 = vadd.f32 %v796_v50, %v795_v34  ;;  %918 = vmatpush.msra.mxu1 %v2728_v39  ;;  %1043 = vmatpush.msrb.mxu2 %v2256_v1  ;;  %v3144_v1 = vld [vmem:[#allocation18_spill] sm:$0xff] }
 0x36e   :  { %898 = vmatpush.msra.mxu0 %v2723_v38  ;;  %958 = vmatpush.msra.mxu3 %v2735_v48 }
 0x36f   :  { %874 = vmatmul.f32.vlgmr.msrb.gmra.mxu3 %v797_v44  ;;  %1023 = vmatpush.msrb.mxu1 %v2251_v53  ;;  %v3143_v53 = vld [vmem:[#allocation10_spill] sm:$0xff] }
 0x370   :  { %1003 = vmatpush.msrb.mxu0 %v2246_v52  ;;  %1063 = vmatpush.msrb.mxu3 %v2261_v2 }
 0x371   :  { %1024 = vmatpush.msrb.mxu1 %v2271_v55  ;;  %1044 = vmatpush.msrb.mxu2 %v2278_v56  ;;  %v3145_v55 = vld [vmem:[#allocation5_spill] sm:$0xff] }
 0x372   :  { %1004 = vmatpush.msrb.mxu0 %v2266_v54  ;;  %1064 = vmatpush.msrb.mxu3 %v2371_v9  ;;  %v3146_v56 = vld [vmem:[#allocation9_spill] sm:$0xff]  ;;  %v3157_v9 = vld [vmem:[#allocation8_spill] sm:$0xff] }
 0x373   :  { %1025 = vmatpush.msrb.mxu1 %v2289_v58  ;;  %1045 = vmatpush.msrb.mxu2 %v2297_v59  ;;  %v3147_v58 = vld [vmem:[#allocation13_spill] sm:$0xff] }
 0x374   :  { %1005 = vmatpush.msrb.mxu0 %v2283_v57  ;;  %1065 = vmatpush.msrb.mxu3 %v2395_v13  ;;  %v3148_v59 = vld [vmem:[#allocation21_spill] sm:$0xff] }
 0x375   :  { %1026 = vmatpush.msrb.mxu1 %v2310_v61  ;;  %1046 = vmatpush.msrb.mxu2 %v2316_v62  ;;  %v3150_v61 = vld [vmem:[#allocation12_spill] sm:$0xff]  ;;  %v3160_v13 = vld [vmem:[#allocation25_spill] sm:$0xff] }
 0x376   :  { %1006 = vmatpush.msrb.mxu0 %v2305_v60  ;;  %1066 = vmatpush.msrb.mxu3 %v2419_v17  ;;  %v3149_v60 = vld [vmem:[#allocation6_spill] sm:$0xff] }
 0x377   :  { %1027 = vmatpush.msrb.mxu1 %v2326_v0  ;;  %1047 = vmatpush.msrb.mxu2 %v2364_v8  ;;  %v3152_v0 = vld [vmem:[#allocation23_spill] sm:$0xff]  ;;  %v3156_v8 = vld [vmem:[#allocation24_spill] sm:$0xff]  ;;  %v3164_v17 = vld [vmem:[#allocation26_spill] sm:$0xff] }
 0x378   :  { %1007 = vmatpush.msrb.mxu0 %v2321_v63  ;;  %1067 = vmatpush.msrb.mxu3 %v2443_v21  ;;  %v3151_v63 = vld [vmem:[#allocation15_spill] sm:$0xff] }
 0x379   :  { %1028 = vmatpush.msrb.mxu1 %v2359_v7  ;;  %1048 = vmatpush.msrb.mxu2 %v2388_v12  ;;  %v3155_v7 = vld [vmem:[#allocation17_spill] sm:$0xff]  ;;  %v3159_v12 = vld [vmem:[#allocation20_spill] sm:$0xff] }
 0x37a   :  { %1008 = vmatpush.msrb.mxu0 %v2333_v3  ;;  %1068 = vmatpush.msrb.mxu3 %v2467_v25 }
 0x37b   :  { %1029 = vmatpush.msrb.mxu1 %v2383_v11  ;;  %1049 = vmatpush.msrb.mxu2 %v2412_v16  ;;  %v3163_v16 = vld [vmem:[#allocation22_spill] sm:$0xff] }
 0x37c   :  { %1009 = vmatpush.msrb.mxu0 %v2341_v4  ;;  %1069 = vmatpush.msrb.mxu3 %v2491_v29  ;;  %v3153_v4 = vld [vmem:[#allocation7_spill] sm:$0xff] }
 0x37d   :  { %1030 = vmatpush.msrb.mxu1 %v2407_v15  ;;  %1050 = vmatpush.msrb.mxu2 %v2436_v20  ;;  %v3162_v15 = vld [vmem:[#allocation19_spill] sm:$0xff] }
 0x37e   :  { %1010 = vmatpush.msrb.mxu0 %v2347_v5  ;;  %1070 = vmatpush.msrb.mxu3 %v2515_v33  ;;  %v3154_v5 = vld [vmem:[#allocation14_spill] sm:$0xff] }
 0x37f   :  { %1031 = vmatpush.msrb.mxu1 %v2431_v19  ;;  %1051 = vmatpush.msrb.mxu2 %v2460_v24  ;;  %v3165_v24 = vld [vmem:[#allocation27_spill] sm:$0xff] }
 0x380   :  { %1011 = vmatpush.msrb.mxu0 %v2354_v6  ;;  %1071 = vmatpush.msrb.mxu3 %v2539_v37 }
 0x381   :  { %1032 = vmatpush.msrb.mxu1 %v2455_v23  ;;  %1052 = vmatpush.msrb.mxu2 %v2484_v28 }
 0x382   :  { %1012 = vmatpush.msrb.mxu0 %v2378_v10  ;;  %1072 = vmatpush.msrb.mxu3 %v2556_v40  ;;  %v3158_v10 = vld [vmem:[#allocation16_spill] sm:$0xff] }
 0x383   :  { %1033 = vmatpush.msrb.mxu1 %v2479_v27  ;;  %1053 = vmatpush.msrb.mxu2 %v3143_v53  ;;  %v3166_v27 = vld [vmem:[#allocation28_spill] sm:$0xff] }
 0x384   :  { %1013 = vmatpush.msrb.mxu0 %v2402_v14  ;;  %1073 = vmatpush.msrb.mxu3 %v3144_v1  ;;  %v3161_v14 = vld [vmem:[#allocation11_spill] sm:$0xff] }
 0x385   :  { %1034 = vmatpush.msrb.mxu1 %v3146_v56  ;;  %1054 = vmatpush.msrb.mxu2 %v3147_v58 }
 0x386   :  { %1014 = vmatpush.msrb.mxu0 %v3145_v55  ;;  %1074 = vmatpush.msrb.mxu3 %v3148_v59 }
 0x387   :  { %1035 = vmatpush.msrb.mxu1 %v3150_v61  ;;  %1055 = vmatpush.msrb.mxu2 %v3151_v63 }
 0x388   :  { %1015 = vmatpush.msrb.mxu0 %v3149_v60  ;;  %1075 = vmatpush.msrb.mxu3 %v3152_v0 }
 0x389   :  { %1036 = vmatpush.msrb.mxu1 %v3154_v5  ;;  %1056 = vmatpush.msrb.mxu2 %v3155_v7 }
 0x38a   :  { %1016 = vmatpush.msrb.mxu0 %v3153_v4  ;;  %1076 = vmatpush.msrb.mxu3 %v3156_v8 }
 0x38b   :  { %1037 = vmatpush.msrb.mxu1 %v3158_v10  ;;  %1057 = vmatpush.msrb.mxu2 %v3159_v12 }
 0x38c   :  { %1017 = vmatpush.msrb.mxu0 %v3157_v9  ;;  %1077 = vmatpush.msrb.mxu3 %v3160_v13 }
 0x38d   :  { %1038 = vmatpush.msrb.mxu1 %v3162_v15  ;;  %1058 = vmatpush.msrb.mxu2 %v3163_v16 }
 0x38e   :  { %1018 = vmatpush.msrb.mxu0 %v3161_v14  ;;  %1078 = vmatpush.msrb.mxu3 %v3164_v17 }
 0x3dd   :  { %v815_v2 = vpop.f32.mrf.mxu0 }
 0x3e4   :  { %v835_v52 = vpop.f32.mrf.mxu1 }
 0x3e5   :  { %v836_v57 = vadd.f32 %v835_v52, %v815_v2  ;;  %v3167_v2 = vld [vmem:[#allocation29_spill] sm:$0xff] }
 0x3eb   :  { %v855_v54 = vpop.f32.mrf.mxu2 }
 0x3ec   :  { %v856_v62 = vadd.f32 %v855_v54, %v836_v57 }
 0x3f2   :  { %v875_v3 = vpop.f32.mrf.mxu3 }
 0x3f3   :  { %v876_v6 = vadd.f32 %v875_v3, %v856_v62 }
 0x3f5   :  { %v878_v11 = vmul.f32 0.03125, %v876_v6 }
 0x3f7   :  { %1457 = vmatmul.msk.f32.vlgmr.msra.gmra.mxu0 %vm879_vm5, %v878_v11  ;;  %1458 = vmatmul.msk.f32.vlgmr.msra.gmra.mxu1 %vm879_vm5, %v878_v11 }
 0x3f8   :  { %1459 = vmatmul.msk.f32.vlgmr.msra.gmra.mxu2 %vm879_vm5, %v878_v11  ;;  %1460 = vmatmul.msk.f32.vlgmr.msra.gmra.mxu3 %vm879_vm5, %v878_v11 }
 0x3f9   :  { %1151 = vmatpush.msra.mxu2 %v2646_v31  ;;  %1111 = vmatpush.msra.mxu0 %v2651_v36 }
 0x3fa   :  { %1131 = vmatpush.msra.mxu1 %v2656_v26  ;;  %1171 = vmatpush.msra.mxu3 %v2663_v32 }
 0x3fb   :  { %1152 = vmatpush.msra.mxu2 %v2668_v35  ;;  %1112 = vmatpush.msra.mxu0 %v2676_v43 }
 0x3fc   :  { %1132 = vmatpush.msra.mxu1 %v2681_v46  ;;  %1172 = vmatpush.msra.mxu3 %v2686_v47 }
 0x3fd   :  { %1153 = vmatpush.msra.mxu2 %v2694_v41  ;;  %1113 = vmatpush.msra.mxu0 %v2699_v45 }
 0x3fe   :  { %1133 = vmatpush.msra.mxu1 %v2704_v42  ;;  %1173 = vmatpush.msra.mxu3 %v2711_v49 }
 0x3ff   :  { %1154 = vmatpush.msra.mxu2 %v2718_v30  ;;  %1114 = vmatpush.msra.mxu0 %v2723_v38 }
 0x400   :  { %1134 = vmatpush.msra.mxu1 %v2728_v39  ;;  %1174 = vmatpush.msra.mxu3 %v2735_v48 }
 0x474   :  { %v900_v19 = vpop.f32.mrf.mxu0  ;;  %v920_v20 = vpop.f32.mrf.mxu1 }
 0x475   :  { %v963_v21 = vperm.slane %v900_v19, 0  ;;  %v964_v23 = vperm.slane %v920_v20, 0  ;;  %v1297_v20 = vld [vmem:[%s3086_s7 + $0x78] sm:$0xff] }
 0x477   :  { %v2824_v25 = vsub.f32 %v3165_v24, %v963_v21  ;;  %v2827_v28 = vsub.f32 %v3166_v27, %v964_v23  ;;  %v1313_v21 = vld [vmem:[%s3086_s7 + $0xf8] sm:$0xff]  ;;  %v1296_v27 = vld [vmem:[%s3086_s7 + $0x70] sm:$0xff] }
 0x478   :  { %v1329_v23 = vld [vmem:[%s3086_s7 + $0x178] sm:$0xff] }
 0x479   :  { %v971_v29 = vmul.f32 %v2824_v25, %v2824_v25  ;;  %v972_v33 = vmul.f32 %v2827_v28, %v2827_v28  ;;  %v1345_v24 = vld [vmem:[%s3086_s7 + $0x1f8] sm:$0xff] }
 0x47b   :  { %v975_v37 = vsel %vm132_vm1, %v971_v29, 0.0  ;;  %v982_v40 = vsel %vm132_vm1, %v972_v33, 0.0  ;;  %v940_v51 = vpop.f32.mrf.mxu2  ;;  %v960_v22 = vpop.f32.mrf.mxu3  ;;  %v1312_v29 = vld [vmem:[%s3086_s7 + $0xf0] sm:$0xff] }
 0x47c   :  { %v976_v34 = vrot.slane %v975_v37, 4  ;;  %v983_v50 = vrot.slane %v982_v40, 4  ;;  %v965_v44 = vperm.slane %v940_v51, 0  ;;  %v966_v52 = vperm.slane %v960_v22, 0  ;;  %v1328_v33 = vld [vmem:[%s3086_s7 + $0x170] sm:$0xff]  ;;  %v1311_v51 = vld [vmem:[%s3086_s7 + $0xe8] sm:$0xff] }
 0x47d   :  { %v1327_v22 = vld [vmem:[%s3086_s7 + $0x168] sm:$0xff] }
 0x47e   :  { %v977_v53 = vadd.f32 %v976_v34, %v975_v37  ;;  %v984_v1 = vadd.f32 %v983_v50, %v982_v40  ;;  %v2836_v54 = vsub.f32 %v3167_v2, %v965_v44  ;;  %v2839_v55 = vsub.f32 %v2639_v18, %v966_v52  ;;  %v1344_v37 = vld [vmem:[%s3086_s7 + $0x1f0] sm:$0xff]  ;;  %v1295_v40 = vld [vmem:[%s3086_s7 + $0x68] sm:$0xff]  ;;  %v689_v50 = vld [vmem:[%s3085_s6] sm:$0x1] }
 0x47f   :  { %v1343_v34 = vld [vmem:[%s3086_s7 + $0x1e8] sm:$0xff]  ;;  %v1294_v44 = vld [vmem:[%s3086_s7 + $0x60] sm:$0xff]  ;;  %v1293_v2 = vld [vmem:[%s3086_s7 + $0x58] sm:$0xff] }
 0x480   :  { %v978_v56 = vrot.slane %v977_v53, 2  ;;  %v985_v57 = vrot.slane %v984_v1, 2  ;;  %v973_v58 = vmul.f32 %v2836_v54, %v2836_v54  ;;  %v974_v59 = vmul.f32 %v2839_v55, %v2839_v55  ;;  %v1310_v52 = vld [vmem:[%s3086_s7 + $0xe0] sm:$0xff] }
 0x482   :  { %v989_v60 = vsel %vm132_vm1, %v973_v58, 0.0  ;;  %v996_v61 = vsel %vm132_vm1, %v974_v59, 0.0  ;;  %v979_v62 = vadd.f32 %v978_v56, %v977_v53  ;;  %v986_v63 = vadd.f32 %v985_v57, %v984_v1  ;;  %v1326_v53 = vld [vmem:[%s3086_s7 + $0x160] sm:$0xff]  ;;  %v1309_v56 = vld [vmem:[%s3086_s7 + $0xd8] sm:$0xff]  ;;  %v1292_v59 = vld [vmem:[%s3086_s7 + $0x50] sm:$0xff] }
 0x483   :  { %v990_v0 = vrot.slane %v989_v60, 4  ;;  %v997_v3 = vrot.slane %v996_v61, 4  ;;  %v1342_v1 = vld [vmem:[%s3086_s7 + $0x1e0] sm:$0xff]  ;;  %v1325_v57 = vld [vmem:[%s3086_s7 + $0x158] sm:$0xff] }
 0x484   :  { %v980_v4 = vrot.slane %v979_v62, 1  ;;  %v987_v5 = vrot.slane %v986_v63, 1  ;;  %v1341_v58 = vld [vmem:[%s3086_s7 + $0x1d8] sm:$0xff] }
 0x485   :  { %v991_v18 = vadd.f32 %v990_v0, %v989_v60  ;;  %v998_v6 = vadd.f32 %v997_v3, %v996_v61  ;;  %v1308_v60 = vld [vmem:[%s3086_s7 + $0xd0] sm:$0xff]  ;;  %v1291_v61 = vld [vmem:[%s3086_s7 + $0x48] sm:$0xff]  ;;  %v1306_v0 = vld [vmem:[%s3086_s7 + $0xc0] sm:$0xff] }
 0x486   :  { %v981_v7 = vadd.f32 %v980_v4, %v979_v62  ;;  %v988_v8 = vadd.f32 %v987_v5, %v986_v63  ;;  %v1307_v62 = vld [vmem:[%s3086_s7 + $0xc8] sm:$0xff]  ;;  %v1290_v63 = vld [vmem:[%s3086_s7 + $0x40] sm:$0xff]  ;;  %v1289_v3 = vld [vmem:[%s3086_s7 + $0x38] sm:$0xff] }
 0x487   :  { %v992_v9 = vrot.slane %v991_v18, 2  ;;  %v999_v10 = vrot.slane %v998_v6, 2  ;;  %v1305_v4 = vld [vmem:[%s3086_s7 + $0xb8] sm:$0xff]  ;;  %v1324_v5 = vld [vmem:[%s3086_s7 + $0x150] sm:$0xff] }
 0x488   :  { %1019 = vmatmul.f32.vlgmr.msrb.gmra.mxu0 %v981_v7  ;;  %1039 = vmatmul.f32.vlgmr.msrb.gmra.mxu1 %v988_v8  ;;  %v1304_v7 = vld [vmem:[%s3086_s7 + $0xb0] sm:$0xff]  ;;  %v1323_v8 = vld [vmem:[%s3086_s7 + $0x148] sm:$0xff] }
 0x489   :  { %v993_v11 = vadd.f32 %v992_v9, %v991_v18  ;;  %v1000_v12 = vadd.f32 %v999_v10, %v998_v6  ;;  %1194 = vmatpush.msrb.mxu0 %v2651_v36  ;;  %1214 = vmatpush.msrb.mxu1 %v2656_v26  ;;  %v1340_v18 = vld [vmem:[%s3086_s7 + $0x1d0] sm:$0xff]  ;;  %v1339_v9 = vld [vmem:[%s3086_s7 + $0x1c8] sm:$0xff] }
 0x48a   :  { %v1288_v6 = vld [vmem:[%s3086_s7 + $0x30] sm:$0xff]  ;;  %v1287_v10 = vld [vmem:[%s3086_s7 + $0x28] sm:$0xff] }
 0x48b   :  { %v994_v13 = vrot.slane %v993_v11, 1  ;;  %v1001_v14 = vrot.slane %v1000_v12, 1  ;;  %1195 = vmatpush.msrb.mxu0 %v2676_v43  ;;  %1215 = vmatpush.msrb.mxu1 %v2681_v46 }
 0x48d   :  { %v995_v15 = vadd.f32 %v994_v13, %v993_v11  ;;  %v1002_v16 = vadd.f32 %v1001_v14, %v1000_v12  ;;  %1196 = vmatpush.msrb.mxu0 %v2699_v45  ;;  %1216 = vmatpush.msrb.mxu1 %v2704_v42  ;;  %v1303_v11 = vld [vmem:[%s3086_s7 + $0xa8] sm:$0xff]  ;;  %v1322_v12 = vld [vmem:[%s3086_s7 + $0x140] sm:$0xff] }
 0x48e   :  { %v1338_v13 = vld [vmem:[%s3086_s7 + $0x1c0] sm:$0xff] }
 0x48f   :  { %1059 = vmatmul.f32.vlgmr.msrb.gmra.mxu2 %v995_v15  ;;  %1079 = vmatmul.f32.vlgmr.msrb.gmra.mxu3 %v1002_v16  ;;  %v1286_v14 = vld [vmem:[%s3086_s7 + $0x20] sm:$0xff]  ;;  %v1321_v16 = vld [vmem:[%s3086_s7 + $0x138] sm:$0xff] }
 0x490   :  { %1234 = vmatpush.msrb.mxu2 %v2646_v31  ;;  %1254 = vmatpush.msrb.mxu3 %v2663_v32  ;;  %v1302_v15 = vld [vmem:[%s3086_s7 + $0xa0] sm:$0xff] }
 0x491   :  { %1197 = vmatpush.msrb.mxu0 %v2723_v38  ;;  %1217 = vmatpush.msrb.mxu1 %v2728_v39 }
 0x492   :  { %1235 = vmatpush.msrb.mxu2 %v2668_v35  ;;  %1255 = vmatpush.msrb.mxu3 %v2686_v47 }
 0x494   :  { %1236 = vmatpush.msrb.mxu2 %v2694_v41  ;;  %1256 = vmatpush.msrb.mxu3 %v2711_v49  ;;  %v688_v49 = vld [vmem:[%s3084_s5] sm:$0x1] }
 0x496   :  { %1237 = vmatpush.msrb.mxu2 %v2718_v30  ;;  %1257 = vmatpush.msrb.mxu3 %v2735_v48 }
 0x505   :  { %v1020_v36 = vpop.f32.mrf.mxu0  ;;  %v1040_v31 = vpop.f32.mrf.mxu1 }
 0x506   :  { %v1041_v26 = vadd.f32 %v1040_v31, %v1020_v36  ;;  %v1337_v36 = vld [vmem:[%s3086_s7 + $0x1b8] sm:$0xff] }
 0x507   :  { %v1285_v31 = vld [vmem:[%s3086_s7 + $0x18] sm:$0xff] }
 0x512   :  { %v1060_v32 = vpop.f32.mrf.mxu2  ;;  %v1080_v46 = vpop.f32.mrf.mxu3 }
 0x513   :  { %v1061_v43 = vadd.f32 %v1060_v32, %v1041_v26  ;;  %v1301_v26 = vld [vmem:[%s3086_s7 + $0x98] sm:$0xff]  ;;  %v1320_v32 = vld [vmem:[%s3086_s7 + $0x130] sm:$0xff] }
 0x515   :  { %v1081_v45 = vadd.f32 %v1080_v46, %v1061_v43  ;;  %v1336_v43 = vld [vmem:[%s3086_s7 + $0x1b0] sm:$0xff] }
 0x516   :  { %v1284_v46 = vld [vmem:[%s3086_s7 + $0x10] sm:$0xff] }
 0x517   :  { %v1083_v42 = vmul.f32 0.03125, %v1081_v45  ;;  %v1300_v45 = vld [vmem:[%s3086_s7 + $0x90] sm:$0xff] }
 0x519   :  { %v1084_v38 = vadd.f32 1e-05, %v1083_v42  ;;  %v1319_v42 = vld [vmem:[%s3086_s7 + $0x128] sm:$0xff] }
 0x51b   :  { %1473 = vrsqrt.f32 %v1084_v38  ;;  %vm1091_vm7 = vweird.f32 %v1084_v38 }
 0x521   :  { %v1474_v35 = vpop.eup %1473 }
 0x522   :  { %v1086_v47 = vmul.f32 %v1474_v35, %v1084_v38  ;;  %vm1092_vm6 = vweird.f32 %v1474_v35  ;;  %v1335_v38 = vld [vmem:[%s3086_s7 + $0x1a8] sm:$0xff] }
 0x523   :  { %vm1093_vm8 = vmor %vm1091_vm7, %vm1092_vm6 }
 0x524   :  { %v1087_v39 = vmul.f32 %v1474_v35, %v1086_v47  ;;  %v1299_v47 = vld [vmem:[%s3086_s7 + $0x88] sm:$0xff] }
 0x526   :  { %v1088_v41 = vmul.f32 0.5, %v1087_v39  ;;  %v1318_v39 = vld [vmem:[%s3086_s7 + $0x120] sm:$0xff] }
 0x528   :  { %v1089_v17 = vsub.f32 1.5, %v1088_v41  ;;  %v1334_v41 = vld [vmem:[%s3086_s7 + $0x1a0] sm:$0xff] }
 0x52a   :  { %v1090_v30 = vmul.f32 %v1474_v35, %v1089_v17  ;;  %v1282_v17 = vld [vmem:[%s3086_s7] sm:$0xff] }
 0x52c   :  { %v1094_v48 = vsel %vm1093_vm8, %v1474_v35, %v1090_v30  ;;  %v1283_v35 = vld [vmem:[%s3086_s7 + $0x8] sm:$0xff]  ;;  %v1317_v30 = vld [vmem:[%s3086_s7 + $0x118] sm:$0xff] }
 0x52d   :  { %v1095_v19 = vmul.f32 %v1094_v48, %v688_v49  ;;  %v1298_v49 = vld [vmem:[%s3086_s7 + $0x80] sm:$0xff]  ;;  %v1333_v48 = vld [vmem:[%s3086_s7 + $0x198] sm:$0xff] }
 0x52f   :  { %1461 = vmatmul.msk.f32.vlgmr.msra.gmra.mxu0 %vm879_vm5, %v1095_v19  ;;  %1462 = vmatmul.msk.f32.vlgmr.msra.gmra.mxu1 %vm879_vm5, %v1095_v19 }
 0x530   :  { %1463 = vmatmul.msk.f32.vlgmr.msra.gmra.mxu2 %vm879_vm5, %v1095_v19  ;;  %1464 = vmatmul.msk.f32.vlgmr.msra.gmra.mxu3 %vm879_vm5, %v1095_v19  ;;  %v1316_v19 = vld [vmem:[%s3086_s7 + $0x110] sm:$0xff] }
 0x531   :  { %1350 = vmatpush.msra.mxu0 %v1297_v20  ;;  %1370 = vmatpush.msra.mxu1 %v1313_v21  ;;  %v1332_v20 = vld [vmem:[%s3086_s7 + $0x190] sm:$0xff]  ;;  %v1315_v21 = vld [vmem:[%s3086_s7 + $0x108] sm:$0xff] }
 0x532   :  { %1390 = vmatpush.msra.mxu2 %v1329_v23  ;;  %1410 = vmatpush.msra.mxu3 %v1345_v24  ;;  %v1331_v23 = vld [vmem:[%s3086_s7 + $0x188] sm:$0xff]  ;;  %v1314_v24 = vld [vmem:[%s3086_s7 + $0x100] sm:$0xff] }
 0x533   :  { %1351 = vmatpush.msra.mxu0 %v1296_v27  ;;  %1371 = vmatpush.msra.mxu1 %v1312_v29  ;;  %v1330_v27 = vld [vmem:[%s3086_s7 + $0x180] sm:$0xff] }
 0x534   :  { %1391 = vmatpush.msra.mxu2 %v1328_v33  ;;  %1411 = vmatpush.msra.mxu3 %v1344_v37 }
 0x535   :  { %1352 = vmatpush.msra.mxu0 %v1295_v40  ;;  %1372 = vmatpush.msra.mxu1 %v1311_v51 }
 0x536   :  { %1392 = vmatpush.msra.mxu2 %v1327_v22  ;;  %1412 = vmatpush.msra.mxu3 %v1343_v34 }
 0x537   :  { %1465 = vmatmul.msk.f32.vlgmr.msrb.gmra.mxu0 %vm879_vm5, %v689_v50  ;;  %1466 = vmatmul.msk.f32.vlgmr.msrb.gmra.mxu1 %vm879_vm5, %v689_v50 }
 0x538   :  { %1467 = vmatmul.msk.f32.vlgmr.msrb.gmra.mxu2 %vm879_vm5, %v689_v50  ;;  %1468 = vmatmul.msk.f32.vlgmr.msrb.gmra.mxu3 %vm879_vm5, %v689_v50 }
 0x539   :  { %1353 = vmatpush.msra.mxu0 %v1294_v44  ;;  %1373 = vmatpush.msra.mxu1 %v1310_v52 }
 0x53a   :  { %1393 = vmatpush.msra.mxu2 %v1326_v53  ;;  %1413 = vmatpush.msra.mxu3 %v1342_v1 }
 0x53b   :  { %1354 = vmatpush.msra.mxu0 %v1293_v2  ;;  %1374 = vmatpush.msra.mxu1 %v1309_v56 }
 0x53c   :  { %1394 = vmatpush.msra.mxu2 %v1325_v57  ;;  %1414 = vmatpush.msra.mxu3 %v1341_v58 }
 0x53d   :  { %1355 = vmatpush.msra.mxu0 %v1292_v59  ;;  %1375 = vmatpush.msra.mxu1 %v1308_v60 }
 0x53e   :  { %1395 = vmatpush.msra.mxu2 %v1324_v5  ;;  %1415 = vmatpush.msra.mxu3 %v1340_v18 }
 0x53f   :  { %1356 = vmatpush.msra.mxu0 %v1291_v61  ;;  %1376 = vmatpush.msra.mxu1 %v1307_v62 }
 0x540   :  { %1396 = vmatpush.msra.mxu2 %v1323_v8  ;;  %1416 = vmatpush.msra.mxu3 %v1339_v9 }
 0x541   :  { %1357 = vmatpush.msra.mxu0 %v1290_v63  ;;  %1377 = vmatpush.msra.mxu1 %v1306_v0 }
 0x542   :  { %1397 = vmatpush.msra.mxu2 %v1322_v12  ;;  %1417 = vmatpush.msra.mxu3 %v1338_v13 }
 0x543   :  { %1358 = vmatpush.msra.mxu0 %v1289_v3  ;;  %1378 = vmatpush.msra.mxu1 %v1305_v4 }
 0x544   :  { %1398 = vmatpush.msra.mxu2 %v1321_v16  ;;  %1418 = vmatpush.msra.mxu3 %v1337_v36 }
 0x545   :  { %1359 = vmatpush.msra.mxu0 %v1288_v6  ;;  %1379 = vmatpush.msra.mxu1 %v1304_v7  ;;  %v1470_v6 = vld [vmem:[%s3087_s8] ss:$0 sm:$0xff] }
 0x546   :  { %1399 = vmatpush.msra.mxu2 %v1320_v32  ;;  %1419 = vmatpush.msra.mxu3 %v1336_v43 }
 0x547   :  { %1360 = vmatpush.msra.mxu0 %v1287_v10  ;;  %1380 = vmatpush.msra.mxu1 %v1303_v11 }
 0x548   :  { %1400 = vmatpush.msra.mxu2 %v1319_v42  ;;  %1420 = vmatpush.msra.mxu3 %v1335_v38 }
 0x549   :  { %1361 = vmatpush.msra.mxu0 %v1286_v14  ;;  %1381 = vmatpush.msra.mxu1 %v1302_v15 }
 0x54a   :  { %1401 = vmatpush.msra.mxu2 %v1318_v39  ;;  %1421 = vmatpush.msra.mxu3 %v1334_v41 }
 0x54b   :  { %1362 = vmatpush.msra.mxu0 %v1285_v31  ;;  %1382 = vmatpush.msra.mxu1 %v1301_v26 }
 0x54c   :  { %1402 = vmatpush.msra.mxu2 %v1317_v30  ;;  %1422 = vmatpush.msra.mxu3 %v1333_v48 }
 0x54d   :  { %1363 = vmatpush.msra.mxu0 %v1284_v46  ;;  %1383 = vmatpush.msra.mxu1 %v1300_v45 }
 0x54e   :  { %1403 = vmatpush.msra.mxu2 %v1316_v19  ;;  %1423 = vmatpush.msra.mxu3 %v1332_v20 }
 0x54f   :  { %1364 = vmatpush.msra.mxu0 %v1283_v35  ;;  %1384 = vmatpush.msra.mxu1 %v1299_v47 }
 0x550   :  { %1404 = vmatpush.msra.mxu2 %v1315_v21  ;;  %1424 = vmatpush.msra.mxu3 %v1331_v23 }
 0x551   :  { %1365 = vmatpush.msra.mxu0 %v1282_v17  ;;  %1385 = vmatpush.msra.mxu1 %v1298_v49 }
 0x552   :  { %1405 = vmatpush.msra.mxu2 %v1314_v24  ;;  %1425 = vmatpush.msra.mxu3 %v1330_v27 }
 0x5ac   :  { %v1116_v29 = vpop.f32.mrf.mxu0  ;;  %v1136_v33 = vpop.f32.mrf.mxu1 }
 0x5ad   :  { %v1262_v37 = vperm.slane %v1116_v29, 0  ;;  %v1263_v40 = vperm.slane %v1136_v33, 0 }
 0x5af   :  { %v1266_v44 = vmul.f32 %v1262_v37, %v2824_v25  ;;  %v1267_v52 = vmul.f32 %v1263_v40, %v2827_v28 }
 0x5b3   :  { %v1156_v51 = vpop.f32.mrf.mxu2  ;;  %v1176_v22 = vpop.f32.mrf.mxu3 }
 0x5b4   :  { %v1199_v34 = vpop.f32.mrf.mxu0  ;;  %v1219_v50 = vpop.f32.mrf.mxu1  ;;  %v1264_v57 = vperm.slane %v1156_v51, 0  ;;  %v1265_v58 = vperm.slane %v1176_v22, 0 }
 0x5b5   :  { %v1270_v53 = vperm.slane %v1199_v34, 0  ;;  %v1271_v1 = vperm.slane %v1219_v50, 0 }
 0x5b6   :  { %v1268_v63 = vmul.f32 %v1264_v57, %v2836_v54  ;;  %v1269_v0 = vmul.f32 %v1265_v58, %v2839_v55 }
 0x5b7   :  { %v1274_v2 = vadd.f32 %v1270_v53, %v1266_v44  ;;  %v1275_v56 = vadd.f32 %v1271_v1, %v1267_v52 }
 0x5b9   :  { %v1278_v59 = vmax.f32 %v1274_v2, 0.0  ;;  %v1279_v60 = vmax.f32 %v1275_v56, 0.0 }
 0x5bb   :  { %v1239_v61 = vpop.f32.mrf.mxu2  ;;  %v1259_v62 = vpop.f32.mrf.mxu3  ;;  %1366 = vmatmul.f32.vlgmr.msra.gmra.mxu0 %v1278_v59  ;;  %1386 = vmatmul.f32.vlgmr.msra.gmra.mxu1 %v1279_v60 }
 0x5bc   :  { %v1272_v3 = vperm.slane %v1239_v61, 0  ;;  %v1273_v25 = vperm.slane %v1259_v62, 0 }
 0x5be   :  { %v1276_v4 = vadd.f32 %v1272_v3, %v1268_v63  ;;  %v1277_v28 = vadd.f32 %v1273_v25, %v1269_v0 }
 0x5c0   :  { %v1280_v5 = vmax.f32 %v1276_v4, 0.0  ;;  %v1281_v18 = vmax.f32 %v1277_v28, 0.0 }
 0x5c2   :  { %1406 = vmatmul.f32.vlgmr.msra.gmra.mxu2 %v1280_v5  ;;  %1426 = vmatmul.f32.vlgmr.msra.gmra.mxu3 %v1281_v18 }
 0x638   :  { %v1367_v7 = vpop.f32.mrf.mxu0  ;;  %v1387_v9 = vpop.f32.mrf.mxu1 }
 0x639   :  { %v1368_v8 = vadd.f32 %v1470_v6, %v1367_v7 }
 0x63b   :  { %v1388_v10 = vadd.f32 %v1387_v9, %v1368_v8 }
 0x645   :  { %v1407_v11 = vpop.f32.mrf.mxu2  ;;  %v1427_v12 = vpop.f32.mrf.mxu3 }
 0x646   :  { %v1408_v54 = vadd.f32 %v1407_v11, %v1388_v10 }
 0x648   :  { %v1428_v55 = vadd.f32 %v1427_v12, %v1408_v54 }
 0x64a   :  { %v1430_v13 = vmax.f32 %v1428_v55, 0.0 }
 0x64c   :  { %1432 = vst.msk [vmem:[#allocation2] sm:$0x3] %vm1431_vm9, %v1430_v13 }
 0x64d   :  { %1443 = dma.vmem_to_hbm [thread:$0]  %s1439_s28, 32, %s1441_s3, [#allocation3]  }
 0x64e   :  { %1499 = dma.done.wait [#allocation3], 32  }
 0x64f   :  { %1500 = vsyncadd [#allocation3], 4294967264 }
 0x650   :  { %1448 = vsyncpa [#allocation3], 1 }

</bundles_post_ra>
